<compile_context>
chip_gen: v7x
topology: tpu7x:2x2x1
jax: 0.10.0
libtpu: 0.0.40
codegen_flags: <defaults>
</compile_context>

<pallas_src>
import jax
import jax.numpy as jnp
from jax.experimental import pallas as pl
from jax.experimental.pallas import tpu as pltpu


# ----------------------------------------------------------------------------
# Pallas kernel: fused expert MLP (three 1x1 convs, BN folded, ReLU), all E
# experts looped inside one grid step, combined for all 4 gates via a
# pre-tiled lane-dense W3 and a per-(expert, batch) column-scale array.
# ----------------------------------------------------------------------------
def _make_moe_kernel(E, S, BPP):
    """E: num experts, S: tokens per batch element, BPP: batches per grid step."""

    def kernel(scale_ref, x_ref, w1_ref, w2_ref, w3_ref, vec_ref, b3_ref, y_ref):
        xb = x_ref[...]                                    # (Mp, C) bf16
        accs = [None] * BPP                                # register accumulators
        for e in range(E):                                 # static unroll (E small)
            h = jnp.dot(xb, w1_ref[e],
                        preferred_element_type=jnp.float32)
            h = h + vec_ref[e, 0:1, :]                     # + b1
            h = jnp.dot(h.astype(jnp.bfloat16), w2_ref[e],
                        preferred_element_type=jnp.float32)
            h = jnp.maximum(h + vec_ref[e, 1:2, :], 0.0)   # BN folded into w2/b2; ReLU
            out = jnp.dot(h.astype(jnp.bfloat16), w3_ref[e],
                          preferred_element_type=jnp.float32)
            out = out + b3_ref[e, 0:1, :]                  # (Mp, NG*C), lane-dense
            for bb in range(BPP):
                r = e * BPP + bb
                upd = out[bb * S:(bb + 1) * S, :] * scale_ref[0, r:r + 1, :]
                accs[bb] = upd if accs[bb] is None else accs[bb] + upd
        for bb in range(BPP):                              # store each segment once
            y_ref[bb * S:(bb + 1) * S, :] = accs[bb]

    return kernel


def _tensorcores_per_device():
    """TensorCores one Pallas grid can be 'parallel'-sharded over (per device)."""
    try:
        kind = jax.devices()[0].device_kind.lower()
    except Exception:  # pragma: no cover
        return 1
    # Megacore chips (v4, v5p) and v7x expose 2 TensorCores per Pallas device;
    # the single-core chips (v2/v3 per-core devices, v5e, v6e) expose 1.
    if ("v4" in kind) or ("v5p" in kind) or ("7" in kind):
        return 2
    return 1


def moe_expert_combine_all(x_flat, combine_w, params, *, n_parallel):
    """x_flat: (B*S, C) f32; combine_w: (NG, B, E) f32.

    Returns y_all: (B*S, NG*C) f32 where gate g occupies columns [g*C:(g+1)*C].
    """
    NG, B, E = combine_w.shape
    BS, C = x_flat.shape
    S = BS // B
    H2 = params["w1"].shape[2]
    NPAR = n_parallel
    BPP = B // NPAR
    Mp = BPP * S
    NGC = NG * C
    bf = jnp.bfloat16

    # Fold BN(eval) into conv2:  BN(h@W2 + b2) = h@(W2*s) + (b2*s + t).
    w2f = params["w2"] * params["bn_scale"]                     # (E, H2, H2)
    b2f = params["b2"] * params["bn_scale"] + params["bn_shift"]  # (E, 1, H2)
    vecs = jnp.concatenate([params["b1"], b2f], axis=1)         # (E, 2, H2)

    # Tile W3 / b3 across the 4 gates -> matmul-3 output is already (Mp, NG*C).
    w3t = jnp.tile(params["w3"], (1, 1, NG))                    # (E, H2, NG*C)
    b3t = jnp.tile(params["b3"], (1, 1, NG))                    # (E, 1, NG*C)

    # Per-(batch, expert) gate combine weights expanded to lane blocks of C:
    # scale[p, e*BPP+bb, g*C:(g+1)*C] = combine_w[g, p*BPP+bb, e].
    cw_t = jnp.transpose(combine_w, (1, 2, 0))                  # (B, E, NG)
    scale = jnp.repeat(cw_t, C, axis=2)                         # (B, E, NG*C)
    scale = scale.reshape(NPAR, BPP, E, NGC)
    scale = jnp.transpose(scale, (0, 2, 1, 3)).reshape(NPAR, E * BPP, NGC)

    kernel = _make_moe_kernel(E, S, BPP)

    return pl.pallas_call(
        kernel,
        out_shape=jax.ShapeDtypeStruct((BS, NGC), jnp.float32),
        grid_spec=pltpu.PrefetchScalarGridSpec(
            num_scalar_prefetch=0,
            grid=(NPAR,),
            in_specs=[
                pl.BlockSpec((1, E * BPP, NGC), lambda p: (p, 0, 0)),  # combine scale
                pl.BlockSpec((Mp, C),           lambda p: (p, 0)),     # x (bf16)
                pl.BlockSpec((E, C, H2),        lambda p: (0, 0, 0)),  # w1 (bf16)
                pl.BlockSpec((E, H2, H2),       lambda p: (0, 0, 0)),  # w2*bn (bf16)
                pl.BlockSpec((E, H2, NGC),      lambda p: (0, 0, 0)),  # w3 tiled (bf16)
                pl.BlockSpec((E, 2, H2),        lambda p: (0, 0, 0)),  # b1 | b2' (f32)
                pl.BlockSpec((E, 1, NGC),       lambda p: (0, 0, 0)),  # b3 tiled (f32)
            ],
            out_specs=pl.BlockSpec((Mp, NGC), lambda p: (p, 0)),
        ),
        compiler_params=pltpu.CompilerParams(
            dimension_semantics=("parallel",)),
    )(scale,
      x_flat.astype(bf),
      params["w1"].astype(bf),
      w2f.astype(bf),
      w3t.astype(bf),
      vecs,
      b3t)


# ----------------------------------------------------------------------------
# Glue (gating, reshapes, load-balance loss) in plain JAX.
# ----------------------------------------------------------------------------
def cv_squared(v):
    eps = 1e-10
    if v.shape[0] == 1:
        return jnp.zeros((), jnp.float32)
    return jnp.var(v, ddof=1) / (jnp.mean(v) ** 2 + eps)  # torch .var() is unbiased


def moe_forward(x, gates, expert_params, *, top):
    B, C, H, W = x.shape
    NG = len(gates)
    E = gates[0].shape[1]
    S = H * W

    # Gating for all NG gates at once (GAP / transpose hoisted out of the loop).
    x0 = jnp.mean(x, axis=(2, 3))                                   # (B, C)
    gw = jnp.stack(gates, axis=0)                                   # (NG, C, E)
    gate_out = jax.nn.softmax(jnp.einsum("bc,gce->gbe", x0, gw), axis=-1)
    usage = gate_out.sum(axis=1)                                    # (NG, E)
    top_w, top_idx = jax.lax.top_k(gate_out, top)                   # (NG, B, top)
    top_w = jax.nn.softmax(top_w, axis=-1)
    combine_w = jnp.sum(jax.nn.one_hot(top_idx, E, dtype=jnp.float32)
                        * top_w[..., None], axis=2)                 # (NG, B, E)

    # NCHW -> (B*S, C) once, shared by all gates and experts.
    x_flat = jnp.transpose(x, (0, 2, 3, 1)).reshape(B * S, C)

    # Generation-aware parallel split: only split rows where a second
    # TensorCore exists to run them (v7x / megacore).  On v5e / v6e keep one
    # full-M grid step.
    tc = _tensorcores_per_device()
    n_parallel = 2 if (tc >= 2 and B >= 2 and B % 2 == 0) else 1

    y_all = moe_expert_combine_all(x_flat, combine_w, expert_params,
                                   n_parallel=n_parallel)           # (B*S, NG*C)

    y_all = y_all.reshape(B, H, W, NG, C)
    ys = tuple(jnp.transpose(y_all[..., g, :], (0, 3, 1, 2)) for g in range(NG))

    loss = jnp.sum(jax.vmap(cv_squared)(usage))
    return ys[0], ys[1], ys[2], ys[3], loss


# ----------------------------------------------------------------------------
# Pure-JAX reference (same bf16 matmul / f32 accumulate / BN-fold policy).
# ----------------------------------------------------------------------------
def _expert_out_ref(x_flat, p, e):
    bf = jnp.bfloat16
    w2f = (p["w2"][e] * p["bn_scale"][e]).astype(bf)
    b2f = p["b2"][e] * p["bn_scale"][e] + p["bn_shift"][e]
    h = jnp.dot(x_flat.astype(bf), p["w1"][e].astype(bf),
                preferred_element_type=jnp.float32) + p["b1"][e]
    h = jnp.maximum(jnp.dot(h.astype(bf), w2f,
                            preferred_element_type=jnp.float32) + b2f, 0.0)
    return jnp.dot(h.astype(bf), p["w3"][e].astype(bf),
                   preferred_element_type=jnp.float32) + p["b3"][e]


def moe_forward_ref(x, gates, p, top):
    B, C, H, W = x.shape
    NG = len(gates)
    E = gates[0].shape[1]
    S = H * W
    x0 = jnp.mean(x, axis=(2, 3))
    gw = jnp.stack(gates, axis=0)
    gate_out = jax.nn.softmax(jnp.einsum("bc,gce->gbe", x0, gw), axis=-1)
    usage = gate_out.sum(axis=1)
    top_w, top_idx = jax.lax.top_k(gate_out, top)
    top_w = jax.nn.softmax(top_w, axis=-1)
    combine_w = jnp.sum(jax.nn.one_hot(top_idx, E, dtype=jnp.float32)
                        * top_w[..., None], axis=2)                 # (NG, B, E)
    x_flat = jnp.transpose(x, (0, 2, 3, 1)).reshape(B * S, C)
    eo = jnp.stack([_expert_out_ref(x_flat, p, e) for e in range(E)])  # (E, BS, C)
    ys = []
    for g in range(NG):
        w_rows = jnp.repeat(combine_w[g], S, axis=0)                # (BS, E)
        yf = jnp.einsum("ebc,be->bc", eo, w_rows)
        ys.append(jnp.transpose(yf.reshape(B, H, W, C), (0, 3, 1, 2)))
    loss = jnp.sum(jax.vmap(cv_squared)(usage))
    return ys[0], ys[1], ys[2], ys[3], loss


# ----------------------------------------------------------------------------
if __name__ == "__main__":
    key = jax.random.PRNGKey(0)
    B, C, H, W = 2, 32, 8, 8          # batch, emb_size, height, width
    E, TOP = 4, 2                     # num_experts, top
    H2 = 2 * C                        # hidden_rate=2

    ks = jax.random.split(key, 16)
    u = lambda k, shape, b: jax.random.uniform(k, shape, jnp.float32, -b, b)

    # Expert parameters (shared across the 4 gates, just like nn.ModuleList).
    expert_params = {
        "w1": u(ks[0], (E, C, H2),  1.0 / (C ** 0.5)),
        "b1": u(ks[1], (E, 1, H2),  1.0 / (C ** 0.5)),
        "w2": u(ks[2], (E, H2, H2), 1.0 / (H2 ** 0.5)),
        "b2": u(ks[3], (E, 1, H2),  1.0 / (H2 ** 0.5)),
        "w3": u(ks[4], (E, H2, C),  1.0 / (H2 ** 0.5)),
        "b3": u(ks[5], (E, 1, C),   1.0 / (H2 ** 0.5)),
    }
    # BatchNorm2d(eval): fold (gamma, beta, running_mean, running_var) into
    # per-channel scale/shift (later folded into W2/b2 inside the wrapper).
    gamma = 1.0 + 0.1 * u(ks[6], (E, 1, H2), 1.0)
    beta = 0.1 * u(ks[7], (E, 1, H2), 1.0)
    rmean = 0.05 * u(ks[8], (E, 1, H2), 1.0)
    rvar = 1.0 + 0.1 * jax.random.uniform(ks[9], (E, 1, H2), jnp.float32)
    bn_eps = 1e-5
    expert_params["bn_scale"] = gamma / jnp.sqrt(rvar + bn_eps)
    expert_params["bn_shift"] = beta - rmean * expert_params["bn_scale"]

    # Gate weights: Xavier-uniform, shape (emb_size, num_experts).
    xb = (6.0 / (C + E)) ** 0.5
    gates = [u(ks[10 + i], (C, E), xb) for i in range(4)]

    x = jax.random.normal(ks[14], (B, C, H, W), jnp.float32)

    fwd = jax.jit(moe_forward, static_argnames=("top",))
    y1, y2, y3, y4, loss = jax.block_until_ready(
        fwd(x, gates, expert_params, top=TOP))

    # Sanity check against a pure-JAX reference with the same precision policy.
    r1, r2, r3, r4, loss_ref = moe_forward_ref(x, gates, expert_params, TOP)
    ok = True
    for y, r in zip((y1, y2, y3, y4), (r1, r2, r3, r4)):
        ok &= bool(jnp.allclose(y, r, rtol=1e-2, atol=1e-2))
        ok &= (y.shape == (B, C, H, W))
    ok &= bool(jnp.isfinite(loss))
    ok &= bool(jnp.allclose(loss, loss_ref, rtol=1e-3, atol=1e-5))
    assert ok

    print("KERNEL_OK")
</pallas_src>

<mosaic_0001>
module attributes {stable_mosaic.version = 11 : i64} {
  func.func @kernel(%arg0: i32, %arg1: memref<1x8x128xf32, #tpu.memory_space<vmem>>, %arg2: memref<128x32xbf16, #tpu.memory_space<vmem>>, %arg3: memref<4x32x64xbf16, #tpu.memory_space<vmem>>, %arg4: memref<4x64x64xbf16, #tpu.memory_space<vmem>>, %arg5: memref<4x64x128xbf16, #tpu.memory_space<vmem>>, %arg6: memref<4x2x64xf32, #tpu.memory_space<vmem>>, %arg7: memref<4x1x128xf32, #tpu.memory_space<vmem>>, %arg8: memref<128x128xf32, #tpu.memory_space<vmem>>) attributes {dimension_semantics = [#tpu.dimension_semantics<parallel>], iteration_bounds = array<i64: 1>, scalar_prefetch = 0 : i64, scratch_operands = 0 : i64, tpu.core_type = #tpu.core_type<tc>, window_params = [{transform_indices = @transform_0, window_bounds = array<i64: 1, 8, 128>}, {transform_indices = @transform_1, window_bounds = array<i64: 128, 32>}, {pipeline_mode = #tpu.pipeline_mode<synchronous>, transform_indices = @transform_2, window_bounds = array<i64: 4, 32, 64>}, {pipeline_mode = #tpu.pipeline_mode<synchronous>, transform_indices = @transform_3, window_bounds = array<i64: 4, 64, 64>}, {pipeline_mode = #tpu.pipeline_mode<synchronous>, transform_indices = @transform_4, window_bounds = array<i64: 4, 64, 128>}, {pipeline_mode = #tpu.pipeline_mode<synchronous>, transform_indices = @transform_5, window_bounds = array<i64: 4, 2, 64>}, {pipeline_mode = #tpu.pipeline_mode<synchronous>, transform_indices = @transform_6, window_bounds = array<i64: 4, 1, 128>}, {transform_indices = @transform_7, window_bounds = array<i64: 128, 128>}]} {
    %c0 = arith.constant 0 : index
    %c0_0 = arith.constant 0 : index
    %0 = vector.load %arg2[%c0, %c0_0] : memref<128x32xbf16, #tpu.memory_space<vmem>>, vector<128x32xbf16>
    %c0_1 = arith.constant 0 : index
    %c0_2 = arith.constant 0 : index
    %c0_3 = arith.constant 0 : index
    %1 = vector.load %arg3[%c0_1, %c0_2, %c0_3] : memref<4x32x64xbf16, #tpu.memory_space<vmem>>, vector<1x32x64xbf16>
    %2 = vector.shape_cast %1 : vector<1x32x64xbf16> to vector<32x64xbf16>
    %cst = arith.constant dense<0.000000e+00> : vector<128x64xf32>
    %3 = tpu.matmul %0, %2, %cst {dimension_numbers = #tpu.dot_dimension_numbers<[1], [0], [0], [1], [0, 0, 1, 1], [], []>} : vector<128x32xbf16>, vector<32x64xbf16>, vector<128x64xf32> -> vector<128x64xf32>
    %c0_4 = arith.constant 0 : index
    %c0_5 = arith.constant 0 : index
    %c0_6 = arith.constant 0 : index
    %4 = vector.load %arg6[%c0_4, %c0_5, %c0_6] : memref<4x2x64xf32, #tpu.memory_space<vmem>>, vector<1x1x64xf32>
    %5 = vector.shape_cast %4 : vector<1x1x64xf32> to vector<1x64xf32>
    %6 = vector.broadcast %5 : vector<1x64xf32> to vector<128x64xf32>
    %7 = arith.addf %3, %6 : vector<128x64xf32>
    %8 = arith.truncf %7 : vector<128x64xf32> to vector<128x64xbf16>
    %c0_7 = arith.constant 0 : index
    %c0_8 = arith.constant 0 : index
    %c0_9 = arith.constant 0 : index
    %9 = vector.load %arg4[%c0_7, %c0_8, %c0_9] : memref<4x64x64xbf16, #tpu.memory_space<vmem>>, vector<1x64x64xbf16>
    %10 = vector.shape_cast %9 : vector<1x64x64xbf16> to vector<64x64xbf16>
    %cst_10 = arith.constant dense<0.000000e+00> : vector<128x64xf32>
    %11 = tpu.matmul %8, %10, %cst_10 {dimension_numbers = #tpu.dot_dimension_numbers<[1], [0], [0], [1], [0, 0, 1, 1], [], []>} : vector<128x64xbf16>, vector<64x64xbf16>, vector<128x64xf32> -> vector<128x64xf32>
    %c0_11 = arith.constant 0 : index
    %c1 = arith.constant 1 : index
    %c0_12 = arith.constant 0 : index
    %12 = vector.load %arg6[%c0_11, %c1, %c0_12] : memref<4x2x64xf32, #tpu.memory_space<vmem>>, vector<1x1x64xf32>
    %13 = vector.shape_cast %12 : vector<1x1x64xf32> to vector<1x64xf32>
    %14 = vector.broadcast %13 : vector<1x64xf32> to vector<128x64xf32>
    %15 = arith.addf %11, %14 : vector<128x64xf32>
    %cst_13 = arith.constant 0.000000e+00 : f32
    %16 = vector.broadcast %cst_13 : f32 to vector<128x64xf32>
    %17 = arith.maximumf %15, %16 : vector<128x64xf32>
    %18 = arith.truncf %17 : vector<128x64xf32> to vector<128x64xbf16>
    %c0_14 = arith.constant 0 : index
    %c0_15 = arith.constant 0 : index
    %c0_16 = arith.constant 0 : index
    %19 = vector.load %arg5[%c0_14, %c0_15, %c0_16] : memref<4x64x128xbf16, #tpu.memory_space<vmem>>, vector<1x64x128xbf16>
    %20 = vector.shape_cast %19 : vector<1x64x128xbf16> to vector<64x128xbf16>
    %cst_17 = arith.constant dense<0.000000e+00> : vector<128x128xf32>
    %21 = tpu.matmul %18, %20, %cst_17 {dimension_numbers = #tpu.dot_dimension_numbers<[1], [0], [0], [1], [0, 0, 1, 1], [], []>} : vector<128x64xbf16>, vector<64x128xbf16>, vector<128x128xf32> -> vector<128x128xf32>
    %c0_18 = arith.constant 0 : index
    %c0_19 = arith.constant 0 : index
    %c0_20 = arith.constant 0 : index
    %22 = vector.load %arg7[%c0_18, %c0_19, %c0_20] : memref<4x1x128xf32, #tpu.memory_space<vmem>>, vector<1x1x128xf32>
    %23 = vector.shape_cast %22 : vector<1x1x128xf32> to vector<1x128xf32>
    %24 = vector.broadcast %23 : vector<1x128xf32> to vector<128x128xf32>
    %25 = arith.addf %21, %24 : vector<128x128xf32>
    %26 = vector.extract_strided_slice %25 {offsets = [0, 0], sizes = [64, 128], strides = [1, 1]} : vector<128x128xf32> to vector<64x128xf32>
    %c0_21 = arith.constant 0 : index
    %c0_22 = arith.constant 0 : index
    %c0_23 = arith.constant 0 : index
    %27 = vector.load %arg1[%c0_21, %c0_22, %c0_23] : memref<1x8x128xf32, #tpu.memory_space<vmem>>, vector<1x1x128xf32>
    %28 = vector.shape_cast %27 : vector<1x1x128xf32> to vector<1x128xf32>
    %29 = vector.broadcast %28 : vector<1x128xf32> to vector<64x128xf32>
    %30 = arith.mulf %26, %29 : vector<64x128xf32>
    %31 = vector.extract_strided_slice %25 {offsets = [64, 0], sizes = [64, 128], strides = [1, 1]} : vector<128x128xf32> to vector<64x128xf32>
    %c0_24 = arith.constant 0 : index
    %c1_25 = arith.constant 1 : index
    %c0_26 = arith.constant 0 : index
    %32 = vector.load %arg1[%c0_24, %c1_25, %c0_26] : memref<1x8x128xf32, #tpu.memory_space<vmem>>, vector<1x1x128xf32>
    %33 = vector.shape_cast %32 : vector<1x1x128xf32> to vector<1x128xf32>
    %34 = vector.broadcast %33 : vector<1x128xf32> to vector<64x128xf32>
    %35 = arith.mulf %31, %34 : vector<64x128xf32>
    %c1_27 = arith.constant 1 : index
    %c0_28 = arith.constant 0 : index
    %c0_29 = arith.constant 0 : index
    %36 = vector.load %arg3[%c1_27, %c0_28, %c0_29] : memref<4x32x64xbf16, #tpu.memory_space<vmem>>, vector<1x32x64xbf16>
    %37 = vector.shape_cast %36 : vector<1x32x64xbf16> to vector<32x64xbf16>
    %cst_30 = arith.constant dense<0.000000e+00> : vector<128x64xf32>
    %38 = tpu.matmul %0, %37, %cst_30 {dimension_numbers = #tpu.dot_dimension_numbers<[1], [0], [0], [1], [0, 0, 1, 1], [], []>} : vector<128x32xbf16>, vector<32x64xbf16>, vector<128x64xf32> -> vector<128x64xf32>
    %c1_31 = arith.constant 1 : index
    %c0_32 = arith.constant 0 : index
    %c0_33 = arith.constant 0 : index
    %39 = vector.load %arg6[%c1_31, %c0_32, %c0_33] : memref<4x2x64xf32, #tpu.memory_space<vmem>>, vector<1x1x64xf32>
    %40 = vector.shape_cast %39 : vector<1x1x64xf32> to vector<1x64xf32>
    %41 = vector.broadcast %40 : vector<1x64xf32> to vector<128x64xf32>
    %42 = arith.addf %38, %41 : vector<128x64xf32>
    %43 = arith.truncf %42 : vector<128x64xf32> to vector<128x64xbf16>
    %c1_34 = arith.constant 1 : index
    %c0_35 = arith.constant 0 : index
    %c0_36 = arith.constant 0 : index
    %44 = vector.load %arg4[%c1_34, %c0_35, %c0_36] : memref<4x64x64xbf16, #tpu.memory_space<vmem>>, vector<1x64x64xbf16>
    %45 = vector.shape_cast %44 : vector<1x64x64xbf16> to vector<64x64xbf16>
    %cst_37 = arith.constant dense<0.000000e+00> : vector<128x64xf32>
    %46 = tpu.matmul %43, %45, %cst_37 {dimension_numbers = #tpu.dot_dimension_numbers<[1], [0], [0], [1], [0, 0, 1, 1], [], []>} : vector<128x64xbf16>, vector<64x64xbf16>, vector<128x64xf32> -> vector<128x64xf32>
    %c1_38 = arith.constant 1 : index
    %c1_39 = arith.constant 1 : index
    %c0_40 = arith.constant 0 : index
    %47 = vector.load %arg6[%c1_38, %c1_39, %c0_40] : memref<4x2x64xf32, #tpu.memory_space<vmem>>, vector<1x1x64xf32>
    %48 = vector.shape_cast %47 : vector<1x1x64xf32> to vector<1x64xf32>
    %49 = vector.broadcast %48 : vector<1x64xf32> to vector<128x64xf32>
    %50 = arith.addf %46, %49 : vector<128x64xf32>
    %cst_41 = arith.constant 0.000000e+00 : f32
    %51 = vector.broadcast %cst_41 : f32 to vector<128x64xf32>
    %52 = arith.maximumf %50, %51 : vector<128x64xf32>
    %53 = arith.truncf %52 : vector<128x64xf32> to vector<128x64xbf16>
    %c1_42 = arith.constant 1 : index
    %c0_43 = arith.constant 0 : index
    %c0_44 = arith.constant 0 : index
    %54 = vector.load %arg5[%c1_42, %c0_43, %c0_44] : memref<4x64x128xbf16, #tpu.memory_space<vmem>>, vector<1x64x128xbf16>
    %55 = vector.shape_cast %54 : vector<1x64x128xbf16> to vector<64x128xbf16>
    %cst_45 = arith.constant dense<0.000000e+00> : vector<128x128xf32>
    %56 = tpu.matmul %53, %55, %cst_45 {dimension_numbers = #tpu.dot_dimension_numbers<[1], [0], [0], [1], [0, 0, 1, 1], [], []>} : vector<128x64xbf16>, vector<64x128xbf16>, vector<128x128xf32> -> vector<128x128xf32>
    %c1_46 = arith.constant 1 : index
    %c0_47 = arith.constant 0 : index
    %c0_48 = arith.constant 0 : index
    %57 = vector.load %arg7[%c1_46, %c0_47, %c0_48] : memref<4x1x128xf32, #tpu.memory_space<vmem>>, vector<1x1x128xf32>
    %58 = vector.shape_cast %57 : vector<1x1x128xf32> to vector<1x128xf32>
    %59 = vector.broadcast %58 : vector<1x128xf32> to vector<128x128xf32>
    %60 = arith.addf %56, %59 : vector<128x128xf32>
    %61 = vector.extract_strided_slice %60 {offsets = [0, 0], sizes = [64, 128], strides = [1, 1]} : vector<128x128xf32> to vector<64x128xf32>
    %c0_49 = arith.constant 0 : index
    %c2 = arith.constant 2 : index
    %c0_50 = arith.constant 0 : index
    %62 = vector.load %arg1[%c0_49, %c2, %c0_50] : memref<1x8x128xf32, #tpu.memory_space<vmem>>, vector<1x1x128xf32>
    %63 = vector.shape_cast %62 : vector<1x1x128xf32> to vector<1x128xf32>
    %64 = vector.broadcast %63 : vector<1x128xf32> to vector<64x128xf32>
    %65 = arith.mulf %61, %64 : vector<64x128xf32>
    %66 = arith.addf %30, %65 : vector<64x128xf32>
    %67 = vector.extract_strided_slice %60 {offsets = [64, 0], sizes = [64, 128], strides = [1, 1]} : vector<128x128xf32> to vector<64x128xf32>
    %c0_51 = arith.constant 0 : index
    %c3 = arith.constant 3 : index
    %c0_52 = arith.constant 0 : index
    %68 = vector.load %arg1[%c0_51, %c3, %c0_52] : memref<1x8x128xf32, #tpu.memory_space<vmem>>, vector<1x1x128xf32>
    %69 = vector.shape_cast %68 : vector<1x1x128xf32> to vector<1x128xf32>
    %70 = vector.broadcast %69 : vector<1x128xf32> to vector<64x128xf32>
    %71 = arith.mulf %67, %70 : vector<64x128xf32>
    %72 = arith.addf %35, %71 : vector<64x128xf32>
    %c2_53 = arith.constant 2 : index
    %c0_54 = arith.constant 0 : index
    %c0_55 = arith.constant 0 : index
    %73 = vector.load %arg3[%c2_53, %c0_54, %c0_55] : memref<4x32x64xbf16, #tpu.memory_space<vmem>>, vector<1x32x64xbf16>
    %74 = vector.shape_cast %73 : vector<1x32x64xbf16> to vector<32x64xbf16>
    %cst_56 = arith.constant dense<0.000000e+00> : vector<128x64xf32>
    %75 = tpu.matmul %0, %74, %cst_56 {dimension_numbers = #tpu.dot_dimension_numbers<[1], [0], [0], [1], [0, 0, 1, 1], [], []>} : vector<128x32xbf16>, vector<32x64xbf16>, vector<128x64xf32> -> vector<128x64xf32>
    %c2_57 = arith.constant 2 : index
    %c0_58 = arith.constant 0 : index
    %c0_59 = arith.constant 0 : index
    %76 = vector.load %arg6[%c2_57, %c0_58, %c0_59] : memref<4x2x64xf32, #tpu.memory_space<vmem>>, vector<1x1x64xf32>
    %77 = vector.shape_cast %76 : vector<1x1x64xf32> to vector<1x64xf32>
    %78 = vector.broadcast %77 : vector<1x64xf32> to vector<128x64xf32>
    %79 = arith.addf %75, %78 : vector<128x64xf32>
    %80 = arith.truncf %79 : vector<128x64xf32> to vector<128x64xbf16>
    %c2_60 = arith.constant 2 : index
    %c0_61 = arith.constant 0 : index
    %c0_62 = arith.constant 0 : index
    %81 = vector.load %arg4[%c2_60, %c0_61, %c0_62] : memref<4x64x64xbf16, #tpu.memory_space<vmem>>, vector<1x64x64xbf16>
    %82 = vector.shape_cast %81 : vector<1x64x64xbf16> to vector<64x64xbf16>
    %cst_63 = arith.constant dense<0.000000e+00> : vector<128x64xf32>
    %83 = tpu.matmul %80, %82, %cst_63 {dimension_numbers = #tpu.dot_dimension_numbers<[1], [0], [0], [1], [0, 0, 1, 1], [], []>} : vector<128x64xbf16>, vector<64x64xbf16>, vector<128x64xf32> -> vector<128x64xf32>
    %c2_64 = arith.constant 2 : index
    %c1_65 = arith.constant 1 : index
    %c0_66 = arith.constant 0 : index
    %84 = vector.load %arg6[%c2_64, %c1_65, %c0_66] : memref<4x2x64xf32, #tpu.memory_space<vmem>>, vector<1x1x64xf32>
    %85 = vector.shape_cast %84 : vector<1x1x64xf32> to vector<1x64xf32>
    %86 = vector.broadcast %85 : vector<1x64xf32> to vector<128x64xf32>
    %87 = arith.addf %83, %86 : vector<128x64xf32>
    %cst_67 = arith.constant 0.000000e+00 : f32
    %88 = vector.broadcast %cst_67 : f32 to vector<128x64xf32>
    %89 = arith.maximumf %87, %88 : vector<128x64xf32>
    %90 = arith.truncf %89 : vector<128x64xf32> to vector<128x64xbf16>
    %c2_68 = arith.constant 2 : index
    %c0_69 = arith.constant 0 : index
    %c0_70 = arith.constant 0 : index
    %91 = vector.load %arg5[%c2_68, %c0_69, %c0_70] : memref<4x64x128xbf16, #tpu.memory_space<vmem>>, vector<1x64x128xbf16>
    %92 = vector.shape_cast %91 : vector<1x64x128xbf16> to vector<64x128xbf16>
    %cst_71 = arith.constant dense<0.000000e+00> : vector<128x128xf32>
    %93 = tpu.matmul %90, %92, %cst_71 {dimension_numbers = #tpu.dot_dimension_numbers<[1], [0], [0], [1], [0, 0, 1, 1], [], []>} : vector<128x64xbf16>, vector<64x128xbf16>, vector<128x128xf32> -> vector<128x128xf32>
    %c2_72 = arith.constant 2 : index
    %c0_73 = arith.constant 0 : index
    %c0_74 = arith.constant 0 : index
    %94 = vector.load %arg7[%c2_72, %c0_73, %c0_74] : memref<4x1x128xf32, #tpu.memory_space<vmem>>, vector<1x1x128xf32>
    %95 = vector.shape_cast %94 : vector<1x1x128xf32> to vector<1x128xf32>
    %96 = vector.broadcast %95 : vector<1x128xf32> to vector<128x128xf32>
    %97 = arith.addf %93, %96 : vector<128x128xf32>
    %98 = vector.extract_strided_slice %97 {offsets = [0, 0], sizes = [64, 128], strides = [1, 1]} : vector<128x128xf32> to vector<64x128xf32>
    %c0_75 = arith.constant 0 : index
    %c4 = arith.constant 4 : index
    %c0_76 = arith.constant 0 : index
    %99 = vector.load %arg1[%c0_75, %c4, %c0_76] : memref<1x8x128xf32, #tpu.memory_space<vmem>>, vector<1x1x128xf32>
    %100 = vector.shape_cast %99 : vector<1x1x128xf32> to vector<1x128xf32>
    %101 = vector.broadcast %100 : vector<1x128xf32> to vector<64x128xf32>
    %102 = arith.mulf %98, %101 : vector<64x128xf32>
    %103 = arith.addf %66, %102 : vector<64x128xf32>
    %104 = vector.extract_strided_slice %97 {offsets = [64, 0], sizes = [64, 128], strides = [1, 1]} : vector<128x128xf32> to vector<64x128xf32>
    %c0_77 = arith.constant 0 : index
    %c5 = arith.constant 5 : index
    %c0_78 = arith.constant 0 : index
    %105 = vector.load %arg1[%c0_77, %c5, %c0_78] : memref<1x8x128xf32, #tpu.memory_space<vmem>>, vector<1x1x128xf32>
    %106 = vector.shape_cast %105 : vector<1x1x128xf32> to vector<1x128xf32>
    %107 = vector.broadcast %106 : vector<1x128xf32> to vector<64x128xf32>
    %108 = arith.mulf %104, %107 : vector<64x128xf32>
    %109 = arith.addf %72, %108 : vector<64x128xf32>
    %c3_79 = arith.constant 3 : index
    %c0_80 = arith.constant 0 : index
    %c0_81 = arith.constant 0 : index
    %110 = vector.load %arg3[%c3_79, %c0_80, %c0_81] : memref<4x32x64xbf16, #tpu.memory_space<vmem>>, vector<1x32x64xbf16>
    %111 = vector.shape_cast %110 : vector<1x32x64xbf16> to vector<32x64xbf16>
    %cst_82 = arith.constant dense<0.000000e+00> : vector<128x64xf32>
    %112 = tpu.matmul %0, %111, %cst_82 {dimension_numbers = #tpu.dot_dimension_numbers<[1], [0], [0], [1], [0, 0, 1, 1], [], []>} : vector<128x32xbf16>, vector<32x64xbf16>, vector<128x64xf32> -> vector<128x64xf32>
    %c3_83 = arith.constant 3 : index
    %c0_84 = arith.constant 0 : index
    %c0_85 = arith.constant 0 : index
    %113 = vector.load %arg6[%c3_83, %c0_84, %c0_85] : memref<4x2x64xf32, #tpu.memory_space<vmem>>, vector<1x1x64xf32>
    %114 = vector.shape_cast %113 : vector<1x1x64xf32> to vector<1x64xf32>
    %115 = vector.broadcast %114 : vector<1x64xf32> to vector<128x64xf32>
    %116 = arith.addf %112, %115 : vector<128x64xf32>
    %117 = arith.truncf %116 : vector<128x64xf32> to vector<128x64xbf16>
    %c3_86 = arith.constant 3 : index
    %c0_87 = arith.constant 0 : index
    %c0_88 = arith.constant 0 : index
    %118 = vector.load %arg4[%c3_86, %c0_87, %c0_88] : memref<4x64x64xbf16, #tpu.memory_space<vmem>>, vector<1x64x64xbf16>
    %119 = vector.shape_cast %118 : vector<1x64x64xbf16> to vector<64x64xbf16>
    %cst_89 = arith.constant dense<0.000000e+00> : vector<128x64xf32>
    %120 = tpu.matmul %117, %119, %cst_89 {dimension_numbers = #tpu.dot_dimension_numbers<[1], [0], [0], [1], [0, 0, 1, 1], [], []>} : vector<128x64xbf16>, vector<64x64xbf16>, vector<128x64xf32> -> vector<128x64xf32>
    %c3_90 = arith.constant 3 : index
    %c1_91 = arith.constant 1 : index
    %c0_92 = arith.constant 0 : index
    %121 = vector.load %arg6[%c3_90, %c1_91, %c0_92] : memref<4x2x64xf32, #tpu.memory_space<vmem>>, vector<1x1x64xf32>
    %122 = vector.shape_cast %121 : vector<1x1x64xf32> to vector<1x64xf32>
    %123 = vector.broadcast %122 : vector<1x64xf32> to vector<128x64xf32>
    %124 = arith.addf %120, %123 : vector<128x64xf32>
    %cst_93 = arith.constant 0.000000e+00 : f32
    %125 = vector.broadcast %cst_93 : f32 to vector<128x64xf32>
    %126 = arith.maximumf %124, %125 : vector<128x64xf32>
    %127 = arith.truncf %126 : vector<128x64xf32> to vector<128x64xbf16>
    %c3_94 = arith.constant 3 : index
    %c0_95 = arith.constant 0 : index
    %c0_96 = arith.constant 0 : index
    %128 = vector.load %arg5[%c3_94, %c0_95, %c0_96] : memref<4x64x128xbf16, #tpu.memory_space<vmem>>, vector<1x64x128xbf16>
    %129 = vector.shape_cast %128 : vector<1x64x128xbf16> to vector<64x128xbf16>
    %cst_97 = arith.constant dense<0.000000e+00> : vector<128x128xf32>
    %130 = tpu.matmul %127, %129, %cst_97 {dimension_numbers = #tpu.dot_dimension_numbers<[1], [0], [0], [1], [0, 0, 1, 1], [], []>} : vector<128x64xbf16>, vector<64x128xbf16>, vector<128x128xf32> -> vector<128x128xf32>
    %c3_98 = arith.constant 3 : index
    %c0_99 = arith.constant 0 : index
    %c0_100 = arith.constant 0 : index
    %131 = vector.load %arg7[%c3_98, %c0_99, %c0_100] : memref<4x1x128xf32, #tpu.memory_space<vmem>>, vector<1x1x128xf32>
    %132 = vector.shape_cast %131 : vector<1x1x128xf32> to vector<1x128xf32>
    %133 = vector.broadcast %132 : vector<1x128xf32> to vector<128x128xf32>
    %134 = arith.addf %130, %133 : vector<128x128xf32>
    %135 = vector.extract_strided_slice %134 {offsets = [0, 0], sizes = [64, 128], strides = [1, 1]} : vector<128x128xf32> to vector<64x128xf32>
    %c0_101 = arith.constant 0 : index
    %c6 = arith.constant 6 : index
    %c0_102 = arith.constant 0 : index
    %136 = vector.load %arg1[%c0_101, %c6, %c0_102] : memref<1x8x128xf32, #tpu.memory_space<vmem>>, vector<1x1x128xf32>
    %137 = vector.shape_cast %136 : vector<1x1x128xf32> to vector<1x128xf32>
    %138 = vector.broadcast %137 : vector<1x128xf32> to vector<64x128xf32>
    %139 = arith.mulf %135, %138 : vector<64x128xf32>
    %140 = arith.addf %103, %139 : vector<64x128xf32>
    %141 = vector.extract_strided_slice %134 {offsets = [64, 0], sizes = [64, 128], strides = [1, 1]} : vector<128x128xf32> to vector<64x128xf32>
    %c0_103 = arith.constant 0 : index
    %c7 = arith.constant 7 : index
    %c0_104 = arith.constant 0 : index
    %142 = vector.load %arg1[%c0_103, %c7, %c0_104] : memref<1x8x128xf32, #tpu.memory_space<vmem>>, vector<1x1x128xf32>
    %143 = vector.shape_cast %142 : vector<1x1x128xf32> to vector<1x128xf32>
    %144 = vector.broadcast %143 : vector<1x128xf32> to vector<64x128xf32>
    %145 = arith.mulf %141, %144 : vector<64x128xf32>
    %146 = arith.addf %109, %145 : vector<64x128xf32>
    %c0_105 = arith.constant 0 : index
    %c0_106 = arith.constant 0 : index
    %147 = vector.load %arg8[%c0_105, %c0_106] : memref<128x128xf32, #tpu.memory_space<vmem>>, vector<64x128xf32>
    tpu.vector_store %arg8[%c0_105, %c0_106], %140 {strides = array<i32>} : memref<128x128xf32, #tpu.memory_space<vmem>>, vector<64x128xf32>,
    %c64 = arith.constant 64 : index
    %c0_107 = arith.constant 0 : index
    %148 = vector.load %arg8[%c64, %c0_107] : memref<128x128xf32, #tpu.memory_space<vmem>>, vector<64x128xf32>
    tpu.vector_store %arg8[%c64, %c0_107], %146 {strides = array<i32>} : memref<128x128xf32, #tpu.memory_space<vmem>>, vector<64x128xf32>,
    return
  }
  func.func @transform_0(%arg0: i32) -> (i32, i32, i32) {
    %c0_i32 = arith.constant 0 : i32
    %c0_i32_0 = arith.constant 0 : i32
    %c0_i32_1 = arith.constant 0 : i32
    return %arg0, %c0_i32, %c0_i32_0 : i32, i32, i32
  }
  func.func @transform_1(%arg0: i32) -> (i32, i32) {
    %c0_i32 = arith.constant 0 : i32
    %c0_i32_0 = arith.constant 0 : i32
    return %arg0, %c0_i32 : i32, i32
  }
  func.func @transform_2(%arg0: i32) -> (i32, i32, i32) {
    %c0_i32 = arith.constant 0 : i32
    %c0_i32_0 = arith.constant 0 : i32
    %c0_i32_1 = arith.constant 0 : i32
    %c0_i32_2 = arith.constant 0 : i32
    return %c0_i32, %c0_i32_0, %c0_i32_1 : i32, i32, i32
  }
  func.func @transform_3(%arg0: i32) -> (i32, i32, i32) {
    %c0_i32 = arith.constant 0 : i32
    %c0_i32_0 = arith.constant 0 : i32
    %c0_i32_1 = arith.constant 0 : i32
    %c0_i32_2 = arith.constant 0 : i32
    return %c0_i32, %c0_i32_0, %c0_i32_1 : i32, i32, i32
  }
  func.func @transform_4(%arg0: i32) -> (i32, i32, i32) {
    %c0_i32 = arith.constant 0 : i32
    %c0_i32_0 = arith.constant 0 : i32
    %c0_i32_1 = arith.constant 0 : i32
    %c0_i32_2 = arith.constant 0 : i32
    return %c0_i32, %c0_i32_0, %c0_i32_1 : i32, i32, i32
  }
  func.func @transform_5(%arg0: i32) -> (i32, i32, i32) {
    %c0_i32 = arith.constant 0 : i32
    %c0_i32_0 = arith.constant 0 : i32
    %c0_i32_1 = arith.constant 0 : i32
    %c0_i32_2 = arith.constant 0 : i32
    return %c0_i32, %c0_i32_0, %c0_i32_1 : i32, i32, i32
  }
  func.func @transform_6(%arg0: i32) -> (i32, i32, i32) {
    %c0_i32 = arith.constant 0 : i32
    %c0_i32_0 = arith.constant 0 : i32
    %c0_i32_1 = arith.constant 0 : i32
    %c0_i32_2 = arith.constant 0 : i32
    return %c0_i32, %c0_i32_0, %c0_i32_1 : i32, i32, i32
  }
  func.func @transform_7(%arg0: i32) -> (i32, i32) {
    %c0_i32 = arith.constant 0 : i32
    %c0_i32_0 = arith.constant 0 : i32
    return %arg0, %c0_i32 : i32, i32
  }
}

</mosaic_0001>

<bundles_post_ra>
// kernel: moe_forward.1
= control target key start
LH: loop header
LB: loop body
LE: loop exit
PB: predicated region body
PF: predicated region fallthrough
CT: control target
= control target key end

     0   :  { %vm104_vm0 = vcmask 261120   ;;  %vm271_vm1 = vcmask 523264   ;;  %s3549_s2 = inlined_call_operand.vmem [shape: bf16[4,32,64], index: 2, kind: input, shape index: {}]   ;;  %s3550_s1 = inlined_call_operand.vmem [shape: bf16[128,32], index: 1, kind: input, shape index: {}]   ;;  %s3551_s3 = inlined_call_operand.vmem [shape: bf16[4,64,64], index: 3, kind: input, shape index: {}]   ;;  %s3552_s4 = inlined_call_operand.vmem [shape: bf16[4,64,128], index: 4, kind: input, shape index: {}]   ;;  %s3553_s5 = inlined_call_operand.vmem [shape: f32[4,2,64], index: 5, kind: input, shape index: {}]   ;;  %s3554_s6 = inlined_call_operand.vmem [shape: f32[4,1,128], index: 6, kind: input, shape index: {}]   ;;  %s3555_s0 = inlined_call_operand.vmem [shape: f32[1,8,128], index: 0, kind: input, shape index: {}]   ;;  %s3556_s7 = inlined_call_operand.vmem [shape: f32[128,128], index: 7, kind: output, shape index: {}]  }
   0x1   :  { %v2809_v0 = vld [vmem:[%s3549_s2] sm:$0xff]   ;;  %v2810_v1 = vld [vmem:[%s3549_s2 + $0x8] sm:$0xff]   ;;  %v2918_v4 = vld [vmem:[%s3550_s1 + $0x10] sm:$0xff]  }
   0x2   :  { %2537 = vmatprep.subr.bf16.mxu0 %v2809_v0  ;;  %v2906_v2 = vld [vmem:[%s3550_s1] sm:$0xff]   ;;  %v2913_v3 = vld [vmem:[%s3550_s1 + $0x8] sm:$0xff]   ;;  %v2933_v7 = vld [vmem:[%s3550_s1 + $0x18] sm:$0xff]  }
   0x3   :  { %2538 = vmatpush3.bf16.msra.mxu0 %v2809_v0  ;;  %2541 = vmatprep.mubr.msk.bf16.mxu0 %vm104_vm0, %v2906_v2  ;;  %v2819_v5 = vld [vmem:[%s3551_s3] sm:$0xff]   ;;  %v2820_v6 = vld [vmem:[%s3551_s3 + $0x8] sm:$0xff]   ;;  %v2952_v10 = vld [vmem:[%s3550_s1 + $0x30] sm:$0xff]  }
   0x4   :  { %2539 = vmatprep.subr.bf16.mxu0 %v2810_v1  ;;  %2557 = vmatprep.subr.bf16.mxu1 %v2819_v5  ;;  %v2938_v8 = vld [vmem:[%s3550_s1 + $0x20] sm:$0xff]   ;;  %v2947_v9 = vld [vmem:[%s3550_s1 + $0x28] sm:$0xff]   ;;  %v2961_v11 = vld [vmem:[%s3550_s1 + $0x38] sm:$0xff]  }
   0x5   :  { %2558 = vmatpush3.bf16.msra.mxu1 %v2819_v5  ;;  %v2821_v12 = vld [vmem:[%s3551_s3 + $0x10] sm:$0xff]   ;;  %v2822_v13 = vld [vmem:[%s3551_s3 + $0x18] sm:$0xff]   ;;  %v2825_v15 = vld [vmem:[%s3552_s4] sm:$0xff]  }
   0x6   :  { %2559 = vmatprep.subr.bf16.mxu1 %v2820_v6  ;;  %v2823_v14 = vld [vmem:[%s3549_s2 + $0x10] sm:$0xff]   ;;  %v2826_v16 = vld [vmem:[%s3552_s4 + $0x8] sm:$0xff]   ;;  %v2168_v19 = vld [vmem:[%s3553_s5] ss:$0 sm:$0xff] }
   0x7   :  { %2540 = vmatpush3.bf16.msra.mxu0 %v2810_v1  ;;  %v2827_v17 = vld [vmem:[%s3552_s4 + $0x10] sm:$0xff]   ;;  %v2824_v29 = vld [vmem:[%s3549_s2 + $0x18] sm:$0xff]   ;;  %v2829_v61 = vld [vmem:[%s3551_s3 + $0x20] sm:$0xff]  }
   0x8   :  { %2581 = vmatprep.subr.bf16.mxu0 %v2825_v15  ;;  %v2828_v60 = vld [vmem:[%s3552_s4 + $0x18] sm:$0xff]   ;;  %v3022_v62 = vld [vmem:[%s3553_s5 + $0x1] ss:$0 sm:$0xff] }
   0x9   :  { %2560 = vmatpush3.bf16.msra.mxu1 %v2820_v6 }
   0xa   :  { %2542 = vmatmul.mubr.msk.bf16.vlgmr.msra.gmra.mrb[0].mxu0 %vm104_vm0, %v2913_v3  ;;  %2561 = vmatprep.subr.bf16.mxu1 %v2821_v12 }
   0xb   :  { %2545 = vmatprep.mubr.msk.bf16.mxu0 %vm104_vm0, %v2918_v4  ;;  %2582 = vmatpush3.bf16.msra.mxu0 %v2825_v15 }
   0xc   :  { %2583 = vmatprep.subr.bf16.mxu0 %v2826_v16 }
   0xd   :  { %2562 = vmatpush3.bf16.msra.mxu1 %v2821_v12 }
   0xe   :  { %2563 = vmatprep.subr.bf16.mxu1 %v2822_v13 }
   0xf   :  { %2584 = vmatpush3.bf16.msra.mxu0 %v2826_v16 }
  0x10   :  { %2585 = vmatprep.subr.bf16.mxu0 %v2827_v17 }
  0x11   :  { %2564 = vmatpush3.bf16.msra.mxu1 %v2822_v13 }
  0x12   :  { %2546 = vmatmul.mubr.msk.bf16.gmra.mrb[4].mxu0 %vm104_vm0, %v2933_v7  ;;  %2605 = vmatprep.subr.bf16.mxu1 %v2823_v14 }
  0x13   :  { %2549 = vmatprep.mubr.msk.bf16.mxu0 %vm104_vm0, %v2938_v8  ;;  %2586 = vmatpush3.bf16.msra.mxu0 %v2827_v17 }
  0x14   :  { %2587 = vmatprep.subr.bf16.mxu0 %v2828_v60 }
  0x17   :  { %2588 = vmatpush3.bf16.msra.mxu0 %v2828_v60 }
  0x18   :  { %2625 = vmatprep.subr.bf16.mxu0 %v2829_v61 }
  0x1a   :  { %2550 = vmatmul.mubr.msk.bf16.gmra.mrb[8].mxu0 %vm104_vm0, %v2947_v9 }
  0x1b   :  { %2553 = vmatprep.mubr.msk.bf16.mxu0 %vm104_vm0, %v2952_v10 }
  0x22   :  { %2554 = vmatmul.mubr.msk.bf16.gmra.mrb[12].mxu0 %vm104_vm0, %v2961_v11 }
  0xdd   :  { %v2543_v18 = vpop.f32.mrb[0].mxu0 }
  0xde   :  { %v163_v20 = vpop.f32.mrb[1].mxu0  ;;  %v172_v22 = vadd.f32 %v2543_v18, %v2168_v19 }
  0xdf   :  { %v2544_v21 = vpop.f32.mrb[2].mxu0  ;;  %v164_v25 = vadd.f32 %v2168_v19, %v163_v20 }
  0xe0   :  { %v175_v23 = vadd.f32 %v2544_v21, %v2168_v19  ;;  %v166_v24 = vpop.f32.mrb[3].mxu0 }
  0xe1   :  { %v167_v26 = vadd.f32 %v2168_v19, %v166_v24  ;;  %v2830_v24 = vld [vmem:[%s3551_s3 + $0x28] sm:$0xff]  }
  0xe2   :  { %v227_v27 = vpack.c.bf16 %v175_v23, %v172_v22 }
  0xe3   :  { %v226_v28 = vpack.c.bf16 %v167_v26, %v164_v25 }
  0xe5   :  { %v2547_v30 = vpop.f32.mrb[4].mxu0  ;;  %2565 = vmatprep.mubr.msk.bf16.mxu1 %vm271_vm1, %v226_v28 }
  0xe6   :  { %v179_v31 = vpop.f32.mrb[5].mxu0  ;;  %2566 = vmatmul.mubr.msk.bf16.vlgmr.msra.gmra.mrb[0].mxu1 %vm271_vm1, %v227_v27  ;;  %v188_v33 = vadd.f32 %v2547_v30, %v2168_v19 }
  0xe7   :  { %v2548_v32 = vpop.f32.mrb[6].mxu0  ;;  %2606 = vmatpush3.bf16.msra.mxu1 %v2823_v14  ;;  %v180_v36 = vadd.f32 %v2168_v19, %v179_v31 }
  0xe8   :  { %v191_v34 = vadd.f32 %v2548_v32, %v2168_v19  ;;  %v182_v35 = vpop.f32.mrb[7].mxu0  ;;  %2607 = vmatprep.subr.bf16.mxu1 %v2824_v29  ;;  %v2831_v32 = vld [vmem:[%s3551_s3 + $0x30] sm:$0xff]  }
  0xe9   :  { %v183_v37 = vadd.f32 %v2168_v19, %v182_v35 }
  0xea   :  { %v229_v38 = vpack.c.bf16 %v191_v34, %v188_v33 }
  0xeb   :  { %v228_v39 = vpack.c.bf16 %v183_v37, %v180_v36  ;;  %2608 = vmatpush3.bf16.msra.mxu1 %v2824_v29 }
  0xed   :  { %v2551_v40 = vpop.f32.mrb[8].mxu0  ;;  %2569 = vmatprep.mubr.msk.bf16.mxu1 %vm271_vm1, %v228_v39 }
  0xee   :  { %v195_v41 = vpop.f32.mrb[9].mxu0  ;;  %2570 = vmatmul.mubr.msk.bf16.gmra.mrb[4].mxu1 %vm271_vm1, %v229_v38  ;;  %v204_v43 = vadd.f32 %v2551_v40, %v2168_v19  ;;  %v2832_v40 = vld [vmem:[%s3551_s3 + $0x38] sm:$0xff]  }
  0xef   :  { %v2552_v42 = vpop.f32.mrb[10].mxu0  ;;  %v196_v46 = vadd.f32 %v2168_v19, %v195_v41 }
  0xf0   :  { %v207_v44 = vadd.f32 %v2552_v42, %v2168_v19  ;;  %v198_v45 = vpop.f32.mrb[11].mxu0 }
  0xf1   :  { %v199_v47 = vadd.f32 %v2168_v19, %v198_v45 }
  0xf2   :  { %v231_v48 = vpack.c.bf16 %v207_v44, %v204_v43 }
  0xf3   :  { %v230_v49 = vpack.c.bf16 %v199_v47, %v196_v46 }
  0xf5   :  { %v2555_v50 = vpop.f32.mrb[12].mxu0  ;;  %2573 = vmatprep.mubr.msk.bf16.mxu1 %vm271_vm1, %v230_v49 }
  0xf6   :  { %v211_v51 = vpop.f32.mrb[13].mxu0  ;;  %2574 = vmatmul.mubr.msk.bf16.gmra.mrb[8].mxu1 %vm271_vm1, %v231_v48  ;;  %v220_v53 = vadd.f32 %v2555_v50, %v2168_v19  ;;  %v2833_v48 = vld [vmem:[%s3549_s2 + $0x20] sm:$0xff]  }
  0xf7   :  { %v2556_v52 = vpop.f32.mrb[14].mxu0  ;;  %v212_v56 = vadd.f32 %v2168_v19, %v211_v51 }
  0xf8   :  { %v223_v54 = vadd.f32 %v2556_v52, %v2168_v19  ;;  %v214_v55 = vpop.f32.mrb[15].mxu0 }
  0xf9   :  { %v215_v57 = vadd.f32 %v2168_v19, %v214_v55 }
  0xfa   :  { %v233_v58 = vpack.c.bf16 %v223_v54, %v220_v53 }
  0xfb   :  { %v232_v59 = vpack.c.bf16 %v215_v57, %v212_v56 }
  0xfd   :  { %2577 = vmatprep.mubr.msk.bf16.mxu1 %vm271_vm1, %v232_v59 }
  0xfe   :  { %2578 = vmatmul.mubr.msk.bf16.gmra.mrb[12].mxu1 %vm271_vm1, %v233_v58 }
  0xff   :  { %2609 = vmatprep.mubr.msk.bf16.mxu1 %vm104_vm0, %v2906_v2 }
 0x106   :  { %2610 = vmatmul.mubr.msk.bf16.vlgmr.msra.gmra.mrb[16].mxu1 %vm104_vm0, %v2913_v3 }
 0x107   :  { %2613 = vmatprep.mubr.msk.bf16.mxu1 %vm104_vm0, %v2918_v4 }
 0x10e   :  { %2614 = vmatmul.mubr.msk.bf16.gmra.mrb[20].mxu1 %vm104_vm0, %v2933_v7 }
 0x10f   :  { %2617 = vmatprep.mubr.msk.bf16.mxu1 %vm104_vm0, %v2938_v8 }
 0x116   :  { %2618 = vmatmul.mubr.msk.bf16.gmra.mrb[24].mxu1 %vm104_vm0, %v2947_v9 }
 0x117   :  { %2621 = vmatprep.mubr.msk.bf16.mxu1 %vm104_vm0, %v2952_v10 }
 0x11e   :  { %2622 = vmatmul.mubr.msk.bf16.gmra.mrb[28].mxu1 %vm104_vm0, %v2961_v11 }
 0x1b9   :  { %v2567_v63 = vpop.f32.mrb[0].mxu1 }
 0x1ba   :  { %v339_v0 = vadd.f32 %v2567_v63, %v3022_v62  ;;  %v330_v1 = vpop.f32.mrb[1].mxu1 }
 0x1bb   :  { %v331_v5 = vadd.f32 %v3022_v62, %v330_v1  ;;  %v2568_v6 = vpop.f32.mrb[2].mxu1 }
 0x1bc   :  { %v342_v12 = vadd.f32 %v2568_v6, %v3022_v62  ;;  %v333_v13 = vpop.f32.mrb[3].mxu1  ;;  %v395_v15 = vmax.f32 %v339_v0, 0.0 }
 0x1bd   :  { %v334_v14 = vadd.f32 %v3022_v62, %v333_v13  ;;  %v393_v17 = vmax.f32 %v331_v5, 0.0  ;;  %v2220_v5 = vld [vmem:[%s3553_s5 + $0x2] ss:$0 sm:$0xff] }
 0x1be   :  { %v396_v16 = vmax.f32 %v342_v12, 0.0 }
 0x1bf   :  { %v394_v18 = vmax.f32 %v334_v14, 0.0 }
 0x1c0   :  { %v410_v19 = vpack.c.bf16 %v396_v16, %v395_v15 }
 0x1c1   :  { %v409_v20 = vpack.c.bf16 %v394_v18, %v393_v17  ;;  %v2571_v21 = vpop.f32.mrb[4].mxu1 }
 0x1c2   :  { %v355_v22 = vadd.f32 %v2571_v21, %v3022_v62  ;;  %v346_v23 = vpop.f32.mrb[5].mxu1 }
 0x1c3   :  { %v347_v25 = vadd.f32 %v3022_v62, %v346_v23  ;;  %v2572_v26 = vpop.f32.mrb[6].mxu1  ;;  %2589 = vmatprep.mubr.msk.bf16.mxu0 %vm271_vm1, %v409_v20 }
 0x1c4   :  { %v358_v27 = vadd.f32 %v2572_v26, %v3022_v62  ;;  %v349_v28 = vpop.f32.mrb[7].mxu1  ;;  %2590 = vmatmul.mubr.msk.bf16.vlgmr.msra.gmra.mrb[16].mxu0 %vm271_vm1, %v410_v19  ;;  %v399_v30 = vmax.f32 %v355_v22, 0.0 }
 0x1c5   :  { %v350_v29 = vadd.f32 %v3022_v62, %v349_v28  ;;  %2626 = vmatpush3.bf16.msra.mxu0 %v2829_v61  ;;  %v397_v33 = vmax.f32 %v347_v25, 0.0  ;;  %v2834_v25 = vld [vmem:[%s3549_s2 + $0x28] sm:$0xff]  }
 0x1c6   :  { %v400_v31 = vmax.f32 %v358_v27, 0.0  ;;  %2627 = vmatprep.subr.bf16.mxu0 %v2830_v24 }
 0x1c7   :  { %v398_v34 = vmax.f32 %v350_v29, 0.0 }
 0x1c8   :  { %v412_v35 = vpack.c.bf16 %v400_v31, %v399_v30 }
 0x1c9   :  { %v411_v36 = vpack.c.bf16 %v398_v34, %v397_v33  ;;  %v2575_v37 = vpop.f32.mrb[8].mxu1  ;;  %2628 = vmatpush3.bf16.msra.mxu0 %v2830_v24 }
 0x1ca   :  { %v371_v38 = vadd.f32 %v2575_v37, %v3022_v62  ;;  %v362_v39 = vpop.f32.mrb[9].mxu1  ;;  %2629 = vmatprep.subr.bf16.mxu0 %v2831_v32 }
 0x1cb   :  { %v363_v41 = vadd.f32 %v3022_v62, %v362_v39  ;;  %v2576_v42 = vpop.f32.mrb[10].mxu1  ;;  %2593 = vmatprep.mubr.msk.bf16.mxu0 %vm271_vm1, %v411_v36 }
 0x1cc   :  { %v374_v43 = vadd.f32 %v2576_v42, %v3022_v62  ;;  %v365_v44 = vpop.f32.mrb[11].mxu1  ;;  %2594 = vmatmul.mubr.msk.bf16.gmra.mrb[20].mxu0 %vm271_vm1, %v412_v35  ;;  %v403_v46 = vmax.f32 %v371_v38, 0.0 }
 0x1cd   :  { %v366_v45 = vadd.f32 %v3022_v62, %v365_v44  ;;  %2630 = vmatpush3.bf16.msra.mxu0 %v2831_v32  ;;  %v401_v49 = vmax.f32 %v363_v41, 0.0 }
 0x1ce   :  { %v404_v47 = vmax.f32 %v374_v43, 0.0  ;;  %2631 = vmatprep.subr.bf16.mxu0 %v2832_v40 }
 0x1cf   :  { %v402_v50 = vmax.f32 %v366_v45, 0.0 }
 0x1d0   :  { %v414_v51 = vpack.c.bf16 %v404_v47, %v403_v46 }
 0x1d1   :  { %v413_v52 = vpack.c.bf16 %v402_v50, %v401_v49  ;;  %v2579_v53 = vpop.f32.mrb[12].mxu1  ;;  %2632 = vmatpush3.bf16.msra.mxu0 %v2832_v40 }
 0x1d2   :  { %v387_v54 = vadd.f32 %v2579_v53, %v3022_v62  ;;  %v378_v55 = vpop.f32.mrb[13].mxu1  ;;  %2673 = vmatprep.subr.bf16.mxu0 %v2833_v48  ;;  %v2835_v53 = vld [vmem:[%s3552_s4 + $0x20] sm:$0xff]  }
 0x1d3   :  { %v379_v56 = vadd.f32 %v3022_v62, %v378_v55  ;;  %v2580_v57 = vpop.f32.mrb[14].mxu1  ;;  %2597 = vmatprep.mubr.msk.bf16.mxu0 %vm271_vm1, %v413_v52  ;;  %2649 = vmatprep.subr.bf16.mxu1 %v2835_v53  ;;  %v2837_v55 = vld [vmem:[%s3552_s4 + $0x30] sm:$0xff]  }
 0x1d4   :  { %v390_v58 = vadd.f32 %v2580_v57, %v3022_v62  ;;  %v381_v59 = vpop.f32.mrb[15].mxu1  ;;  %2598 = vmatmul.mubr.msk.bf16.gmra.mrb[24].mxu0 %vm271_vm1, %v414_v51  ;;  %v407_v61 = vmax.f32 %v387_v54, 0.0  ;;  %2650 = vmatpush3.bf16.msra.mxu1 %v2835_v53  ;;  %v2836_v54 = vld [vmem:[%s3552_s4 + $0x28] sm:$0xff]   ;;  %v2839_v57 = vld [vmem:[%s3551_s3 + $0x40] sm:$0xff]  }
 0x1d5   :  { %v382_v60 = vadd.f32 %v3022_v62, %v381_v59  ;;  %v405_v0 = vmax.f32 %v379_v56, 0.0  ;;  %2651 = vmatprep.subr.bf16.mxu1 %v2836_v54  ;;  %v2838_v56 = vld [vmem:[%s3552_s4 + $0x38] sm:$0xff]  }
 0x1d6   :  { %v408_v63 = vmax.f32 %v390_v58, 0.0 }
 0x1d7   :  { %v406_v1 = vmax.f32 %v382_v60, 0.0 }
 0x1d8   :  { %v416_v6 = vpack.c.bf16 %v408_v63, %v407_v61  ;;  %2652 = vmatpush3.bf16.msra.mxu1 %v2836_v54 }
 0x1d9   :  { %v415_v12 = vpack.c.bf16 %v406_v1, %v405_v0  ;;  %v2611_v13 = vpop.f32.mrb[16].mxu1  ;;  %2653 = vmatprep.subr.bf16.mxu1 %v2837_v55 }
 0x1da   :  { %v669_v14 = vadd.f32 %v2611_v13, %v2220_v5  ;;  %v660_v15 = vpop.f32.mrb[17].mxu1 }
 0x1db   :  { %v661_v16 = vadd.f32 %v2220_v5, %v660_v15  ;;  %2601 = vmatprep.mubr.msk.bf16.mxu0 %vm271_vm1, %v415_v12  ;;  %v2612_v17 = vpop.f32.mrb[18].mxu1 }
 0x1dc   :  { %v672_v18 = vadd.f32 %v2612_v17, %v2220_v5  ;;  %2602 = vmatmul.mubr.msk.bf16.gmra.mrb[28].mxu0 %vm271_vm1, %v416_v6  ;;  %v663_v62 = vpop.f32.mrb[19].mxu1  ;;  %2654 = vmatpush3.bf16.msra.mxu1 %v2837_v55 }
 0x1dd   :  { %v664_v19 = vadd.f32 %v2220_v5, %v663_v62  ;;  %2655 = vmatprep.subr.bf16.mxu1 %v2838_v56  ;;  %v3140_v62 = vld [vmem:[%s3553_s5 + $0x3] ss:$0 sm:$0xff] }
 0x1de   :  { %v724_v20 = vpack.c.bf16 %v672_v18, %v669_v14 }
 0x1df   :  { %v723_v21 = vpack.c.bf16 %v664_v19, %v661_v16 }
 0x1e0   :  { %2656 = vmatpush3.bf16.msra.mxu1 %v2838_v56 }
 0x1e1   :  { %v2615_v22 = vpop.f32.mrb[20].mxu1  ;;  %2633 = vmatprep.mubr.msk.bf16.mxu0 %vm271_vm1, %v723_v21  ;;  %2693 = vmatprep.subr.bf16.mxu1 %v2839_v57 }
 0x1e2   :  { %v685_v23 = vadd.f32 %v2615_v22, %v2220_v5  ;;  %v676_v24 = vpop.f32.mrb[21].mxu1 }
 0x1e3   :  { %v677_v26 = vadd.f32 %v2220_v5, %v676_v24  ;;  %v2616_v27 = vpop.f32.mrb[22].mxu1 }
 0x1e4   :  { %v688_v28 = vadd.f32 %v2616_v27, %v2220_v5  ;;  %v679_v29 = vpop.f32.mrb[23].mxu1  ;;  %2634 = vmatmul.mubr.msk.bf16.vlgmr.msra.gmra.mrb[32].mxu0 %vm271_vm1, %v724_v20 }
 0x1e5   :  { %v680_v30 = vadd.f32 %v2220_v5, %v679_v29  ;;  %2674 = vmatpush3.bf16.msra.mxu0 %v2833_v48 }
 0x1e6   :  { %v726_v31 = vpack.c.bf16 %v688_v28, %v685_v23  ;;  %2675 = vmatprep.subr.bf16.mxu0 %v2834_v25 }
 0x1e7   :  { %v725_v32 = vpack.c.bf16 %v680_v30, %v677_v26 }
 0x1e9   :  { %v2619_v33 = vpop.f32.mrb[24].mxu1  ;;  %2637 = vmatprep.mubr.msk.bf16.mxu0 %vm271_vm1, %v725_v32  ;;  %2676 = vmatpush3.bf16.msra.mxu0 %v2834_v25 }
 0x1ea   :  { %v701_v34 = vadd.f32 %v2619_v33, %v2220_v5  ;;  %v692_v35 = vpop.f32.mrb[25].mxu1 }
 0x1eb   :  { %v693_v36 = vadd.f32 %v2220_v5, %v692_v35  ;;  %v2620_v37 = vpop.f32.mrb[26].mxu1 }
 0x1ec   :  { %v704_v38 = vadd.f32 %v2620_v37, %v2220_v5  ;;  %v695_v39 = vpop.f32.mrb[27].mxu1  ;;  %2638 = vmatmul.mubr.msk.bf16.gmra.mrb[36].mxu0 %vm271_vm1, %v726_v31 }
 0x1ed   :  { %v696_v40 = vadd.f32 %v2220_v5, %v695_v39 }
 0x1ee   :  { %v728_v41 = vpack.c.bf16 %v704_v38, %v701_v34 }
 0x1ef   :  { %v727_v42 = vpack.c.bf16 %v696_v40, %v693_v36  ;;  %v2840_v36 = vld [vmem:[%s3551_s3 + $0x48] sm:$0xff]  }
 0x1f1   :  { %v2623_v43 = vpop.f32.mrb[28].mxu1  ;;  %2641 = vmatprep.mubr.msk.bf16.mxu0 %vm271_vm1, %v727_v42 }
 0x1f2   :  { %v717_v44 = vadd.f32 %v2623_v43, %v2220_v5  ;;  %v708_v45 = vpop.f32.mrb[29].mxu1 }
 0x1f3   :  { %v709_v46 = vadd.f32 %v2220_v5, %v708_v45  ;;  %v2624_v47 = vpop.f32.mrb[30].mxu1 }
 0x1f4   :  { %v720_v48 = vadd.f32 %v2624_v47, %v2220_v5  ;;  %v711_v49 = vpop.f32.mrb[31].mxu1  ;;  %2642 = vmatmul.mubr.msk.bf16.gmra.mrb[40].mxu0 %vm271_vm1, %v728_v41 }
 0x1f5   :  { %v712_v50 = vadd.f32 %v2220_v5, %v711_v49 }
 0x1f6   :  { %v730_v51 = vpack.c.bf16 %v720_v48, %v717_v44  ;;  %v2841_v44 = vld [vmem:[%s3551_s3 + $0x50] sm:$0xff]  }
 0x1f7   :  { %v729_v52 = vpack.c.bf16 %v712_v50, %v709_v46 }
 0x1f9   :  { %2645 = vmatprep.mubr.msk.bf16.mxu0 %vm271_vm1, %v729_v52  ;;  %v2842_v52 = vld [vmem:[%s3551_s3 + $0x58] sm:$0xff]  }
 0x1fc   :  { %2646 = vmatmul.mubr.msk.bf16.gmra.mrb[44].mxu0 %vm271_vm1, %v730_v51 }
 0x1fd   :  { %2677 = vmatprep.mubr.msk.bf16.mxu0 %vm104_vm0, %v2906_v2 }
 0x204   :  { %2678 = vmatmul.mubr.msk.bf16.vlgmr.msra.gmra.mrb[48].mxu0 %vm104_vm0, %v2913_v3 }
 0x205   :  { %2681 = vmatprep.mubr.msk.bf16.mxu0 %vm104_vm0, %v2918_v4 }
 0x20c   :  { %2682 = vmatmul.mubr.msk.bf16.gmra.mrb[52].mxu0 %vm104_vm0, %v2933_v7 }
 0x20d   :  { %2685 = vmatprep.mubr.msk.bf16.mxu0 %vm104_vm0, %v2938_v8 }
 0x214   :  { %2686 = vmatmul.mubr.msk.bf16.gmra.mrb[56].mxu0 %vm104_vm0, %v2947_v9 }
 0x215   :  { %2689 = vmatprep.mubr.msk.bf16.mxu0 %vm104_vm0, %v2952_v10 }
 0x21c   :  { %2690 = vmatmul.mubr.msk.bf16.gmra.mrb[60].mxu0 %vm104_vm0, %v2961_v11 }
 0x297   :  { %v3105_v58 = vpop.f32.mrb[16].mxu0 }
 0x298   :  { %v3107_v59 = vpop.f32.mrb[17].mxu0 }
 0x299   :  { %v3109_v60 = vpop.f32.mrb[18].mxu0 }
 0x29a   :  { %v3111_v61 = vpop.f32.mrb[19].mxu0 }
 0x29f   :  { %v3113_v63 = vpop.f32.mrb[20].mxu0 }
 0x2a0   :  { %v3115_v0 = vpop.f32.mrb[21].mxu0 }
 0x2a1   :  { %v3117_v1 = vpop.f32.mrb[22].mxu0 }
 0x2a2   :  { %v3119_v5 = vpop.f32.mrb[23].mxu0 }
 0x2a7   :  { %v3121_v6 = vpop.f32.mrb[24].mxu0 }
 0x2a8   :  { %v3123_v12 = vpop.f32.mrb[25].mxu0 }
 0x2a9   :  { %v3125_v13 = vpop.f32.mrb[26].mxu0 }
 0x2aa   :  { %v3127_v14 = vpop.f32.mrb[27].mxu0 }
 0x2af   :  { %v3129_v15 = vpop.f32.mrb[28].mxu0 }
 0x2b0   :  { %v3131_v16 = vpop.f32.mrb[29].mxu0 }
 0x2b1   :  { %v3133_v17 = vpop.f32.mrb[30].mxu0 }
 0x2b2   :  { %v3135_v18 = vpop.f32.mrb[31].mxu0 }
 0x2b7   :  { %v2635_v19 = vpop.f32.mrb[32].mxu0 }
 0x2b8   :  { %v836_v20 = vadd.f32 %v2635_v19, %v3140_v62  ;;  %v827_v21 = vpop.f32.mrb[33].mxu0 }
 0x2b9   :  { %v828_v22 = vadd.f32 %v3140_v62, %v827_v21  ;;  %v2636_v23 = vpop.f32.mrb[34].mxu0  ;;  %v2843_v21 = vld [vmem:[%s3549_s2 + $0x30] sm:$0xff]  }
 0x2ba   :  { %v839_v24 = vadd.f32 %v2636_v23, %v3140_v62  ;;  %v830_v25 = vpop.f32.mrb[35].mxu0  ;;  %v892_v27 = vmax.f32 %v836_v20, 0.0 }
 0x2bb   :  { %v831_v26 = vadd.f32 %v3140_v62, %v830_v25  ;;  %v890_v29 = vmax.f32 %v828_v22, 0.0 }
 0x2bc   :  { %v893_v28 = vmax.f32 %v839_v24, 0.0 }
 0x2bd   :  { %v891_v30 = vmax.f32 %v831_v26, 0.0 }
 0x2be   :  { %v907_v31 = vpack.c.bf16 %v893_v28, %v892_v27 }
 0x2bf   :  { %v906_v32 = vpack.c.bf16 %v891_v30, %v890_v29  ;;  %v2639_v33 = vpop.f32.mrb[36].mxu0 }
 0x2c0   :  { %v852_v34 = vadd.f32 %v2639_v33, %v3140_v62  ;;  %v843_v35 = vpop.f32.mrb[37].mxu0 }
 0x2c1   :  { %v844_v37 = vadd.f32 %v3140_v62, %v843_v35  ;;  %v2640_v38 = vpop.f32.mrb[38].mxu0  ;;  %2657 = vmatprep.mubr.msk.bf16.mxu1 %vm271_vm1, %v906_v32 }
 0x2c2   :  { %v855_v39 = vadd.f32 %v2640_v38, %v3140_v62  ;;  %v846_v40 = vpop.f32.mrb[39].mxu0  ;;  %2658 = vmatmul.mubr.msk.bf16.vlgmr.msra.gmra.mrb[32].mxu1 %vm271_vm1, %v907_v31  ;;  %v896_v42 = vmax.f32 %v852_v34, 0.0  ;;  %v2282_v38 = vld [vmem:[%s3553_s5 + $0x4] ss:$0 sm:$0xff] }
 0x2c3   :  { %v847_v41 = vadd.f32 %v3140_v62, %v846_v40  ;;  %2694 = vmatpush3.bf16.msra.mxu1 %v2839_v57  ;;  %v894_v45 = vmax.f32 %v844_v37, 0.0 }
 0x2c4   :  { %v897_v43 = vmax.f32 %v855_v39, 0.0  ;;  %2695 = vmatprep.subr.bf16.mxu1 %v2840_v36 }
 0x2c5   :  { %v895_v46 = vmax.f32 %v847_v41, 0.0 }
 0x2c6   :  { %v909_v47 = vpack.c.bf16 %v897_v43, %v896_v42 }
 0x2c7   :  { %v908_v48 = vpack.c.bf16 %v895_v46, %v894_v45  ;;  %v2643_v49 = vpop.f32.mrb[40].mxu0  ;;  %2696 = vmatpush3.bf16.msra.mxu1 %v2840_v36 }
 0x2c8   :  { %v868_v50 = vadd.f32 %v2643_v49, %v3140_v62  ;;  %v859_v51 = vpop.f32.mrb[41].mxu0  ;;  %2697 = vmatprep.subr.bf16.mxu1 %v2841_v44 }
 0x2c9   :  { %v860_v53 = vadd.f32 %v3140_v62, %v859_v51  ;;  %v2644_v54 = vpop.f32.mrb[42].mxu0  ;;  %2661 = vmatprep.mubr.msk.bf16.mxu1 %vm271_vm1, %v908_v48 }
 0x2ca   :  { %v871_v55 = vadd.f32 %v2644_v54, %v3140_v62  ;;  %v862_v56 = vpop.f32.mrb[43].mxu0  ;;  %2662 = vmatmul.mubr.msk.bf16.gmra.mrb[36].mxu1 %vm271_vm1, %v909_v47  ;;  %v900_v19 = vmax.f32 %v868_v50, 0.0 }
 0x2cb   :  { %v863_v57 = vadd.f32 %v3140_v62, %v862_v56  ;;  %2698 = vmatpush3.bf16.msra.mxu1 %v2841_v44  ;;  %v898_v22 = vmax.f32 %v860_v53, 0.0  ;;  %v2844_v53 = vld [vmem:[%s3549_s2 + $0x38] sm:$0xff]  }
 0x2cc   :  { %v901_v20 = vmax.f32 %v871_v55, 0.0  ;;  %2699 = vmatprep.subr.bf16.mxu1 %v2842_v52 }
 0x2cd   :  { %v899_v23 = vmax.f32 %v863_v57, 0.0 }
 0x2ce   :  { %v911_v24 = vpack.c.bf16 %v901_v20, %v900_v19 }
 0x2cf   :  { %v910_v25 = vpack.c.bf16 %v899_v23, %v898_v22  ;;  %v2647_v26 = vpop.f32.mrb[44].mxu0  ;;  %2700 = vmatpush3.bf16.msra.mxu1 %v2842_v52 }
 0x2d0   :  { %v884_v27 = vadd.f32 %v2647_v26, %v3140_v62  ;;  %v875_v28 = vpop.f32.mrb[45].mxu0  ;;  %2741 = vmatprep.subr.bf16.mxu1 %v2843_v21 }
 0x2d1   :  { %v876_v29 = vadd.f32 %v3140_v62, %v875_v28  ;;  %v2648_v30 = vpop.f32.mrb[46].mxu0  ;;  %2665 = vmatprep.mubr.msk.bf16.mxu1 %vm271_vm1, %v910_v25 }
 0x2d2   :  { %v887_v31 = vadd.f32 %v2648_v30, %v3140_v62  ;;  %v878_v32 = vpop.f32.mrb[47].mxu0  ;;  %2666 = vmatmul.mubr.msk.bf16.gmra.mrb[40].mxu1 %vm271_vm1, %v911_v24  ;;  %v904_v34 = vmax.f32 %v884_v27, 0.0 }
 0x2d3   :  { %v879_v33 = vadd.f32 %v3140_v62, %v878_v32  ;;  %v902_v36 = vmax.f32 %v876_v29, 0.0 }
 0x2d4   :  { %v905_v35 = vmax.f32 %v887_v31, 0.0 }
 0x2d5   :  { %v903_v37 = vmax.f32 %v879_v33, 0.0 }
 0x2d6   :  { %v913_v39 = vpack.c.bf16 %v905_v35, %v904_v34 }
 0x2d7   :  { %v912_v40 = vpack.c.bf16 %v903_v37, %v902_v36  ;;  %v2679_v41 = vpop.f32.mrb[48].mxu0 }
 0x2d8   :  { %v1184_v42 = vadd.f32 %v2679_v41, %v2282_v38  ;;  %v1175_v43 = vpop.f32.mrb[49].mxu0 }
 0x2d9   :  { %v1176_v44 = vadd.f32 %v2282_v38, %v1175_v43  ;;  %2669 = vmatprep.mubr.msk.bf16.mxu1 %vm271_vm1, %v912_v40  ;;  %v2680_v45 = vpop.f32.mrb[50].mxu0 }
 0x2da   :  { %v1187_v46 = vadd.f32 %v2680_v45, %v2282_v38  ;;  %2670 = vmatmul.mubr.msk.bf16.gmra.mrb[44].mxu1 %vm271_vm1, %v913_v39  ;;  %v1178_v62 = vpop.f32.mrb[51].mxu0  ;;  %v2275_v45 = vld [vmem:[%s3555_s0 + $0x2] ss:$0 sm:$0xff] }
 0x2db   :  { %v1179_v47 = vadd.f32 %v2282_v38, %v1178_v62 }
 0x2dc   :  { %v1239_v48 = vpack.c.bf16 %v1187_v46, %v1184_v42 }
 0x2dd   :  { %v1238_v49 = vpack.c.bf16 %v1179_v47, %v1176_v44 }
 0x2df   :  { %v2683_v50 = vpop.f32.mrb[52].mxu0  ;;  %2701 = vmatprep.mubr.msk.bf16.mxu1 %vm271_vm1, %v1238_v49 }
 0x2e0   :  { %v1200_v51 = vadd.f32 %v2683_v50, %v2282_v38  ;;  %v1191_v52 = vpop.f32.mrb[53].mxu0 }
 0x2e1   :  { %v1192_v54 = vadd.f32 %v2282_v38, %v1191_v52  ;;  %v2684_v55 = vpop.f32.mrb[54].mxu0 }
 0x2e2   :  { %v1203_v56 = vadd.f32 %v2684_v55, %v2282_v38  ;;  %v1194_v57 = vpop.f32.mrb[55].mxu0  ;;  %2702 = vmatmul.mubr.msk.bf16.vlgmr.msra.gmra.mrb[48].mxu1 %vm271_vm1, %v1239_v48 }
 0x2e3   :  { %v1195_v19 = vadd.f32 %v2282_v38, %v1194_v57  ;;  %2742 = vmatpush3.bf16.msra.mxu1 %v2843_v21 }
 0x2e4   :  { %v1241_v20 = vpack.c.bf16 %v1203_v56, %v1200_v51  ;;  %2743 = vmatprep.subr.bf16.mxu1 %v2844_v53 }
 0x2e5   :  { %v1240_v22 = vpack.c.bf16 %v1195_v19, %v1192_v54 }
 0x2e7   :  { %v2687_v23 = vpop.f32.mrb[56].mxu0  ;;  %2705 = vmatprep.mubr.msk.bf16.mxu1 %vm271_vm1, %v1240_v22  ;;  %2744 = vmatpush3.bf16.msra.mxu1 %v2844_v53 }
 0x2e8   :  { %v1216_v24 = vadd.f32 %v2687_v23, %v2282_v38  ;;  %v1207_v25 = vpop.f32.mrb[57].mxu0 }
 0x2e9   :  { %v1208_v26 = vadd.f32 %v2282_v38, %v1207_v25  ;;  %v2688_v27 = vpop.f32.mrb[58].mxu0 }
 0x2ea   :  { %v1219_v28 = vadd.f32 %v2688_v27, %v2282_v38  ;;  %v1210_v29 = vpop.f32.mrb[59].mxu0  ;;  %2706 = vmatmul.mubr.msk.bf16.gmra.mrb[52].mxu1 %vm271_vm1, %v1241_v20 }
 0x2eb   :  { %v1211_v30 = vadd.f32 %v2282_v38, %v1210_v29 }
 0x2ec   :  { %v1243_v31 = vpack.c.bf16 %v1219_v28, %v1216_v24 }
 0x2ed   :  { %v1242_v32 = vpack.c.bf16 %v1211_v30, %v1208_v26 }
 0x2ef   :  { %v2691_v33 = vpop.f32.mrb[60].mxu0  ;;  %2709 = vmatprep.mubr.msk.bf16.mxu1 %vm271_vm1, %v1242_v32 }
 0x2f0   :  { %v1232_v21 = vadd.f32 %v2691_v33, %v2282_v38  ;;  %v1223_v34 = vpop.f32.mrb[61].mxu0 }
 0x2f1   :  { %v1224_v35 = vadd.f32 %v2282_v38, %v1223_v34  ;;  %v2692_v36 = vpop.f32.mrb[62].mxu0 }
 0x2f2   :  { %v1235_v37 = vadd.f32 %v2692_v36, %v2282_v38  ;;  %v1226_v39 = vpop.f32.mrb[63].mxu0  ;;  %2710 = vmatmul.mubr.msk.bf16.gmra.mrb[56].mxu1 %vm271_vm1, %v1243_v31 }
 0x2f3   :  { %v1227_v40 = vadd.f32 %v2282_v38, %v1226_v39  ;;  %v2213_v38 = vld [vmem:[%s3555_s0] ss:$0 sm:$0xff] }
 0x2f4   :  { %v1245_v41 = vpack.c.bf16 %v1235_v37, %v1232_v21 }
 0x2f5   :  { %v1244_v42 = vpack.c.bf16 %v1227_v40, %v1224_v35 }
 0x2f7   :  { %2713 = vmatprep.mubr.msk.bf16.mxu1 %vm271_vm1, %v1244_v42 }
 0x2fa   :  { %2714 = vmatmul.mubr.msk.bf16.gmra.mrb[60].mxu1 %vm271_vm1, %v1245_v41 }
 0x2fb   :  { %2745 = vmatprep.mubr.msk.bf16.mxu1 %vm104_vm0, %v2906_v2  ;;  %v2845_v2 = vld [vmem:[%s3552_s4 + $0x40] sm:$0xff]  }
 0x2fc   :  { %2717 = vmatprep.subr.bf16.mxu0 %v2845_v2 }
 0x2fd   :  { %2718 = vmatpush3.bf16.msra.mxu0 %v2845_v2 }
 0x302   :  { %2746 = vmatmul.mubr.msk.bf16.vlgmr.msra.gmra.mrb[64].mxu1 %vm104_vm0, %v2913_v3  ;;  %v2846_v3 = vld [vmem:[%s3552_s4 + $0x48] sm:$0xff]  }
 0x303   :  { %2749 = vmatprep.mubr.msk.bf16.mxu1 %vm104_vm0, %v2918_v4  ;;  %2719 = vmatprep.subr.bf16.mxu0 %v2846_v3  ;;  %v2847_v4 = vld [vmem:[%s3552_s4 + $0x50] sm:$0xff]  }
 0x304   :  { %2720 = vmatpush3.bf16.msra.mxu0 %v2846_v3  ;;  %v2214_v3 = vld [vmem:[%s3555_s0 + $0x1] ss:$0 sm:$0xff] }
 0x305   :  { %2721 = vmatprep.subr.bf16.mxu0 %v2847_v4 }
 0x308   :  { %2722 = vmatpush3.bf16.msra.mxu0 %v2847_v4 }
 0x30a   :  { %2750 = vmatmul.mubr.msk.bf16.gmra.mrb[68].mxu1 %vm104_vm0, %v2933_v7  ;;  %v2848_v7 = vld [vmem:[%s3552_s4 + $0x58] sm:$0xff]  }
 0x30b   :  { %2753 = vmatprep.mubr.msk.bf16.mxu1 %vm104_vm0, %v2938_v8  ;;  %2723 = vmatprep.subr.bf16.mxu0 %v2848_v7  ;;  %v3223_v8 = vld [vmem:[%s3551_s3 + $0x60] sm:$0xff]  }
 0x30c   :  { %2724 = vmatpush3.bf16.msra.mxu0 %v2848_v7 }
 0x30d   :  { %2761 = vmatprep.subr.bf16.mxu0 %v3223_v8 }
 0x312   :  { %2754 = vmatmul.mubr.msk.bf16.gmra.mrb[72].mxu1 %vm104_vm0, %v2947_v9  ;;  %v3229_v9 = vld [vmem:[%s3554_s6] ss:$0 sm:$0xff] }
 0x313   :  { %2757 = vmatprep.mubr.msk.bf16.mxu1 %vm104_vm0, %v2952_v10  ;;  %v3234_v10 = vld [vmem:[%s3554_s6 + $0x1] ss:$0 sm:$0xff]  ;;  %v515_v43 = vadd.f32 %v3229_v9, %v3107_v59  ;;  %v526_v46 = vadd.f32 %v3109_v60, %v3229_v9  ;;  %v539_v22 = vadd.f32 %v3113_v63, %v3229_v9  ;;  %v531_v24 = vadd.f32 %v3229_v9, %v3115_v0 }
 0x314   :  { %v542_v27 = vadd.f32 %v3117_v1, %v3229_v9  ;;  %v534_v30 = vadd.f32 %v3229_v9, %v3119_v5  ;;  %v555_v42 = vadd.f32 %v3121_v6, %v3229_v9  ;;  %v547_v4 = vadd.f32 %v3229_v9, %v3123_v12 }
 0x315   :  { %v582_v53 = vmul.f32 %v2213_v38, %v515_v43  ;;  %v585_v56 = vmul.f32 %v2213_v38, %v526_v46  ;;  %v588_v32 = vmul.f32 %v2213_v38, %v539_v22  ;;  %v586_v34 = vmul.f32 %v2213_v38, %v531_v24 }
 0x316   :  { %v589_v37 = vmul.f32 %v2213_v38, %v542_v27  ;;  %v587_v40 = vmul.f32 %v2213_v38, %v534_v30  ;;  %v558_v43 = vadd.f32 %v3125_v13, %v3229_v9  ;;  %v597_v12 = vmul.f32 %v2214_v3, %v555_v42 }
 0x317   :  { %v574_v22 = vadd.f32 %v3133_v17, %v3229_v9  ;;  %v566_v27 = vadd.f32 %v3229_v9, %v3135_v18 }
 0x31a   :  { %2758 = vmatmul.mubr.msk.bf16.gmra.mrb[76].mxu1 %vm104_vm0, %v2961_v11  ;;  %v523_v11 = vadd.f32 %v3105_v58, %v3229_v9  ;;  %v518_v58 = vadd.f32 %v3229_v9, %v3111_v61 }
 0x31c   :  { %v584_v50 = vmul.f32 %v2213_v38, %v523_v11  ;;  %v583_v19 = vmul.f32 %v2213_v38, %v518_v58  ;;  %v2276_v38 = vld [vmem:[%s3555_s0 + $0x3] ss:$0 sm:$0xff] }
 0x395   :  { %v2659_v44 = vpop.f32.mrb[32].mxu1 }
 0x396   :  { %v1022_v62 = vadd.f32 %v2659_v44, %v3234_v10  ;;  %v1013_v47 = vpop.f32.mrb[33].mxu1 }
 0x397   :  { %v1014_v48 = vadd.f32 %v3234_v10, %v1013_v47  ;;  %v2660_v49 = vpop.f32.mrb[34].mxu1 }
 0x398   :  { %v1083_v51 = vmul.f32 %v2275_v45, %v1022_v62  ;;  %v1025_v59 = vadd.f32 %v2660_v49, %v3234_v10  ;;  %v1016_v52 = vpop.f32.mrb[35].mxu1  ;;  %v595_v49 = vmul.f32 %v2214_v3, %v547_v4 }
 0x399   :  { %v1081_v54 = vmul.f32 %v2275_v45, %v1014_v48  ;;  %v1017_v55 = vadd.f32 %v3234_v10, %v1016_v52 }
 0x39a   :  { %v3254_v60 = vadd.f32 %v1083_v51, %v584_v50  ;;  %v1084_v57 = vmul.f32 %v2275_v45, %v1025_v59  ;;  %v598_v59 = vmul.f32 %v2214_v3, %v558_v43 }
 0x39b   :  { %v3256_v20 = vadd.f32 %v1081_v54, %v582_v53  ;;  %v1082_v61 = vmul.f32 %v2275_v45, %v1017_v55  ;;  %v571_v55 = vadd.f32 %v3129_v15, %v3229_v9 }
 0x39c   :  { %v3260_v23 = vadd.f32 %v1084_v57, %v585_v56  ;;  %v563_v57 = vadd.f32 %v3229_v9, %v3131_v16 }
 0x39d   :  { %v3264_v25 = vadd.f32 %v1082_v61, %v583_v19  ;;  %v2663_v26 = vpop.f32.mrb[36].mxu1 }
 0x39e   :  { %v1038_v28 = vadd.f32 %v2663_v26, %v3234_v10  ;;  %v1029_v29 = vpop.f32.mrb[37].mxu1 }
 0x39f   :  { %v1030_v31 = vadd.f32 %v3234_v10, %v1029_v29  ;;  %v2664_v63 = vpop.f32.mrb[38].mxu1  ;;  %v601_v29 = vmul.f32 %v2214_v3, %v571_v55 }
 0x3a0   :  { %v1087_v33 = vmul.f32 %v2275_v45, %v1038_v28  ;;  %v1041_v21 = vadd.f32 %v2664_v63, %v3234_v10  ;;  %v1032_v0 = vpop.f32.mrb[39].mxu1  ;;  %v599_v63 = vmul.f32 %v2214_v3, %v563_v57 }
 0x3a1   :  { %v1085_v35 = vmul.f32 %v2275_v45, %v1030_v31  ;;  %v1033_v36 = vadd.f32 %v3234_v10, %v1032_v0 }
 0x3a2   :  { %v3274_v1 = vadd.f32 %v1087_v33, %v588_v32  ;;  %v1088_v39 = vmul.f32 %v2275_v45, %v1041_v21  ;;  %v602_v21 = vmul.f32 %v2214_v3, %v574_v22 }
 0x3a3   :  { %v3276_v41 = vadd.f32 %v1085_v35, %v586_v34  ;;  %v1086_v5 = vmul.f32 %v2275_v45, %v1033_v36  ;;  %v550_v45 = vadd.f32 %v3229_v9, %v3127_v14  ;;  %v600_v34 = vmul.f32 %v2214_v3, %v566_v27  ;;  %v3327_v9 = vld [vmem:[%s3553_s5 + $0x5] ss:$0 sm:$0xff] }
 0x3a4   :  { %v3280_v2 = vadd.f32 %v1088_v39, %v589_v37 }
 0x3a5   :  { %v3287_v7 = vadd.f32 %v1086_v5, %v587_v40  ;;  %v2667_v11 = vpop.f32.mrb[40].mxu1  ;;  %v596_v53 = vmul.f32 %v2214_v3, %v550_v45 }
 0x3a6   :  { %v1054_v6 = vadd.f32 %v2667_v11, %v3234_v10  ;;  %v1045_v44 = vpop.f32.mrb[41].mxu1 }
 0x3a7   :  { %v1046_v46 = vadd.f32 %v3234_v10, %v1045_v44  ;;  %v2668_v62 = vpop.f32.mrb[42].mxu1 }
 0x3a8   :  { %v1104_v47 = vmul.f32 %v2276_v38, %v1054_v6  ;;  %v1057_v58 = vadd.f32 %v2668_v62, %v3234_v10  ;;  %v1048_v48 = vpop.f32.mrb[43].mxu1 }
 0x3a9   :  { %v1102_v50 = vmul.f32 %v2276_v38, %v1046_v46  ;;  %v1049_v51 = vadd.f32 %v3234_v10, %v1048_v48 }
 0x3aa   :  { %v3300_v13 = vadd.f32 %v1104_v47, %v597_v12  ;;  %v1105_v52 = vmul.f32 %v2276_v38, %v1057_v58  ;;  %v2850_v58 = vld [vmem:[%s3551_s3 + $0x68] sm:$0xff]  }
 0x3ab   :  { %v3302_v54 = vadd.f32 %v1102_v50, %v595_v49  ;;  %v1103_v14 = vmul.f32 %v2276_v38, %v1049_v51 }
 0x3ac   :  { %v3306_v56 = vadd.f32 %v1105_v52, %v598_v59 }
 0x3ad   :  { %v3310_v19 = vadd.f32 %v1103_v14, %v596_v53  ;;  %v2671_v61 = vpop.f32.mrb[44].mxu1  ;;  %v2851_v14 = vld [vmem:[%s3551_s3 + $0x70] sm:$0xff]  }
 0x3ae   :  { %v1070_v24 = vadd.f32 %v2671_v61, %v3234_v10  ;;  %v1061_v26 = vpop.f32.mrb[45].mxu1 }
 0x3af   :  { %v1062_v28 = vadd.f32 %v3234_v10, %v1061_v26  ;;  %v2672_v15 = vpop.f32.mrb[46].mxu1 }
 0x3b0   :  { %v1108_v30 = vmul.f32 %v2276_v38, %v1070_v24  ;;  %v1073_v31 = vadd.f32 %v2672_v15, %v3234_v10  ;;  %v1064_v16 = vpop.f32.mrb[47].mxu1 }
 0x3b1   :  { %v1106_v32 = vmul.f32 %v2276_v38, %v1062_v28  ;;  %v1065_v33 = vadd.f32 %v3234_v10, %v1064_v16 }
 0x3b2   :  { %v3320_v17 = vadd.f32 %v1108_v30, %v601_v29  ;;  %v1109_v0 = vmul.f32 %v2276_v38, %v1073_v31 }
 0x3b3   :  { %v3322_v35 = vadd.f32 %v1106_v32, %v599_v63  ;;  %v1107_v18 = vmul.f32 %v2276_v38, %v1065_v33 }
 0x3b4   :  { %v3329_v36 = vadd.f32 %v1109_v0, %v602_v21 }
 0x3b5   :  { %v3331_v37 = vadd.f32 %v1107_v18, %v600_v34  ;;  %v2703_v39 = vpop.f32.mrb[48].mxu1 }
 0x3b6   :  { %v1351_v10 = vadd.f32 %v2703_v39, %v3327_v9  ;;  %v1342_v40 = vpop.f32.mrb[49].mxu1 }
 0x3b7   :  { %v1343_v5 = vadd.f32 %v3327_v9, %v1342_v40  ;;  %v2704_v42 = vpop.f32.mrb[50].mxu1 }
 0x3b8   :  { %v1354_v3 = vadd.f32 %v2704_v42, %v3327_v9  ;;  %v1345_v4 = vpop.f32.mrb[51].mxu1  ;;  %v1407_v38 = vmax.f32 %v1351_v10, 0.0 }
 0x3b9   :  { %v1346_v11 = vadd.f32 %v3327_v9, %v1345_v4  ;;  %v1405_v6 = vmax.f32 %v1343_v5, 0.0 }
 0x3ba   :  { %v1408_v43 = vmax.f32 %v1354_v3, 0.0 }
 0x3bb   :  { %v1406_v44 = vmax.f32 %v1346_v11, 0.0 }
 0x3bc   :  { %v1422_v45 = vpack.c.bf16 %v1408_v43, %v1407_v38 }
 0x3bd   :  { %v1421_v46 = vpack.c.bf16 %v1406_v44, %v1405_v6  ;;  %v2707_v62 = vpop.f32.mrb[52].mxu1  ;;  %v2344_v6 = vld [vmem:[%s3553_s5 + $0x6] ss:$0 sm:$0xff] }
 0x3be   :  { %v1367_v12 = vadd.f32 %v2707_v62, %v3327_v9  ;;  %v1358_v47 = vpop.f32.mrb[53].mxu1 }
 0x3bf   :  { %v1359_v48 = vadd.f32 %v3327_v9, %v1358_v47  ;;  %v2708_v49 = vpop.f32.mrb[54].mxu1  ;;  %2725 = vmatprep.mubr.msk.bf16.mxu0 %vm271_vm1, %v1421_v46 }
 0x3c0   :  { %v1370_v50 = vadd.f32 %v2708_v49, %v3327_v9  ;;  %v1361_v51 = vpop.f32.mrb[55].mxu1  ;;  %2726 = vmatmul.mubr.msk.bf16.vlgmr.msra.gmra.mrb[64].mxu0 %vm271_vm1, %v1422_v45  ;;  %v1411_v52 = vmax.f32 %v1367_v12, 0.0 }
 0x3c1   :  { %v1362_v59 = vadd.f32 %v3327_v9, %v1361_v51  ;;  %2762 = vmatpush3.bf16.msra.mxu0 %v3223_v8  ;;  %v1409_v55 = vmax.f32 %v1359_v48, 0.0  ;;  %v2852_v8 = vld [vmem:[%s3551_s3 + $0x78] sm:$0xff]  }
 0x3c2   :  { %v1412_v53 = vmax.f32 %v1370_v50, 0.0  ;;  %2763 = vmatprep.subr.bf16.mxu0 %v2850_v58 }
 0x3c3   :  { %v1410_v57 = vmax.f32 %v1362_v59, 0.0 }
 0x3c4   :  { %v1424_v61 = vpack.c.bf16 %v1412_v53, %v1411_v52 }
 0x3c5   :  { %v1423_v22 = vpack.c.bf16 %v1410_v57, %v1409_v55  ;;  %v2711_v24 = vpop.f32.mrb[56].mxu1  ;;  %2764 = vmatpush3.bf16.msra.mxu0 %v2850_v58 }
 0x3c6   :  { %v1383_v26 = vadd.f32 %v2711_v24, %v3327_v9  ;;  %v1374_v27 = vpop.f32.mrb[57].mxu1  ;;  %2765 = vmatprep.subr.bf16.mxu0 %v2851_v14 }
 0x3c7   :  { %v1375_v28 = vadd.f32 %v3327_v9, %v1374_v27  ;;  %v2712_v15 = vpop.f32.mrb[58].mxu1  ;;  %2729 = vmatprep.mubr.msk.bf16.mxu0 %vm271_vm1, %v1423_v22 }
 0x3c8   :  { %v1386_v29 = vadd.f32 %v2712_v15, %v3327_v9  ;;  %v1377_v30 = vpop.f32.mrb[59].mxu1  ;;  %2730 = vmatmul.mubr.msk.bf16.gmra.mrb[68].mxu0 %vm271_vm1, %v1424_v61  ;;  %v1415_v16 = vmax.f32 %v1383_v26, 0.0 }
 0x3c9   :  { %v1378_v31 = vadd.f32 %v3327_v9, %v1377_v30  ;;  %2766 = vmatpush3.bf16.msra.mxu0 %v2851_v14  ;;  %v1413_v32 = vmax.f32 %v1375_v28, 0.0 }
 0x3ca   :  { %v1416_v63 = vmax.f32 %v1386_v29, 0.0  ;;  %2767 = vmatprep.subr.bf16.mxu0 %v2852_v8 }
 0x3cb   :  { %v1414_v33 = vmax.f32 %v1378_v31, 0.0 }
 0x3cc   :  { %v1426_v21 = vpack.c.bf16 %v1416_v63, %v1415_v16 }
 0x3cd   :  { %v1425_v0 = vpack.c.bf16 %v1414_v33, %v1413_v32  ;;  %v2715_v34 = vpop.f32.mrb[60].mxu1  ;;  %2768 = vmatpush3.bf16.msra.mxu0 %v2852_v8 }
 0x3ce   :  { %v1399_v18 = vadd.f32 %v2715_v34, %v3327_v9  ;;  %v1390_v39 = vpop.f32.mrb[61].mxu1 }
 0x3cf   :  { %v1391_v10 = vadd.f32 %v3327_v9, %v1390_v39  ;;  %v2716_v40 = vpop.f32.mrb[62].mxu1  ;;  %2733 = vmatprep.mubr.msk.bf16.mxu0 %vm271_vm1, %v1425_v0 }
 0x3d0   :  { %v1402_v5 = vadd.f32 %v2716_v40, %v3327_v9  ;;  %v1393_v42 = vpop.f32.mrb[63].mxu1  ;;  %2734 = vmatmul.mubr.msk.bf16.gmra.mrb[72].mxu0 %vm271_vm1, %v1426_v21  ;;  %v1419_v4 = vmax.f32 %v1399_v18, 0.0 }
 0x3d1   :  { %v1394_v3 = vadd.f32 %v3327_v9, %v1393_v42  ;;  %v1417_v38 = vmax.f32 %v1391_v10, 0.0 }
 0x3d2   :  { %v1420_v11 = vmax.f32 %v1402_v5, 0.0 }
 0x3d3   :  { %v1418_v43 = vmax.f32 %v1394_v3, 0.0  ;;  %v2853_v3 = vld [vmem:[%s3552_s4 + $0x60] sm:$0xff]  }
 0x3d4   :  { %v1428_v44 = vpack.c.bf16 %v1420_v11, %v1419_v4  ;;  %2785 = vmatprep.subr.bf16.mxu1 %v2853_v3  ;;  %v2854_v4 = vld [vmem:[%s3552_s4 + $0x68] sm:$0xff]   ;;  %v2855_v11 = vld [vmem:[%s3552_s4 + $0x70] sm:$0xff]  }
 0x3d5   :  { %v1427_v45 = vpack.c.bf16 %v1418_v43, %v1417_v38  ;;  %v2747_v46 = vpop.f32.mrb[64].mxu1  ;;  %2786 = vmatpush3.bf16.msra.mxu1 %v2853_v3  ;;  %v2856_v38 = vld [vmem:[%s3552_s4 + $0x78] sm:$0xff]   ;;  %v2324_v43 = vld [vmem:[%s3554_s6 + $0x2] ss:$0 sm:$0xff] }
 0x3d6   :  { %v1699_v62 = vadd.f32 %v2747_v46, %v2344_v6  ;;  %v1690_v12 = vpop.f32.mrb[65].mxu1  ;;  %2787 = vmatprep.subr.bf16.mxu1 %v2854_v4 }
 0x3d7   :  { %v1691_v47 = vadd.f32 %v2344_v6, %v1690_v12  ;;  %2737 = vmatprep.mubr.msk.bf16.mxu0 %vm271_vm1, %v1427_v45  ;;  %v2748_v58 = vpop.f32.mrb[66].mxu1 }
 0x3d8   :  { %v1702_v48 = vadd.f32 %v2748_v58, %v2344_v6  ;;  %2738 = vmatmul.mubr.msk.bf16.gmra.mrb[76].mxu0 %vm271_vm1, %v1428_v44  ;;  %v1693_v9 = vpop.f32.mrb[67].mxu1  ;;  %v2337_v44 = vld [vmem:[%s3555_s0 + $0x4] ss:$0 sm:$0xff] }
 0x3d9   :  { %v1694_v49 = vadd.f32 %v2344_v6, %v1693_v9  ;;  %2788 = vmatpush3.bf16.msra.mxu1 %v2854_v4 }
 0x3da   :  { %v1754_v50 = vpack.c.bf16 %v1702_v48, %v1699_v62  ;;  %2789 = vmatprep.subr.bf16.mxu1 %v2855_v11 }
 0x3db   :  { %v1753_v51 = vpack.c.bf16 %v1694_v49, %v1691_v47 }
 0x3dd   :  { %v2751_v59 = vpop.f32.mrb[68].mxu1  ;;  %2769 = vmatprep.mubr.msk.bf16.mxu0 %vm271_vm1, %v1753_v51  ;;  %2790 = vmatpush3.bf16.msra.mxu1 %v2855_v11 }
 0x3de   :  { %v1715_v52 = vadd.f32 %v2751_v59, %v2344_v6  ;;  %v1706_v53 = vpop.f32.mrb[69].mxu1  ;;  %2791 = vmatprep.subr.bf16.mxu1 %v2856_v38 }
 0x3df   :  { %v1707_v14 = vadd.f32 %v2344_v6, %v1706_v53  ;;  %v2752_v55 = vpop.f32.mrb[70].mxu1 }
 0x3e0   :  { %v1718_v57 = vadd.f32 %v2752_v55, %v2344_v6  ;;  %v1709_v61 = vpop.f32.mrb[71].mxu1  ;;  %2770 = vmatmul.mubr.msk.bf16.vlgmr.msra.gmra.mrb[80].mxu0 %vm271_vm1, %v1754_v50 }
 0x3e1   :  { %v1710_v22 = vadd.f32 %v2344_v6, %v1709_v61  ;;  %2792 = vmatpush3.bf16.msra.mxu1 %v2856_v38 }
 0x3e2   :  { %v1756_v24 = vpack.c.bf16 %v1718_v57, %v1715_v52 }
 0x3e3   :  { %v1755_v26 = vpack.c.bf16 %v1710_v22, %v1707_v14 }
 0x3e5   :  { %v2755_v27 = vpop.f32.mrb[72].mxu1  ;;  %2773 = vmatprep.mubr.msk.bf16.mxu0 %vm271_vm1, %v1755_v26 }
 0x3e6   :  { %v1731_v8 = vadd.f32 %v2755_v27, %v2344_v6  ;;  %v1722_v28 = vpop.f32.mrb[73].mxu1 }
 0x3e7   :  { %v1723_v15 = vadd.f32 %v2344_v6, %v1722_v28  ;;  %v2756_v29 = vpop.f32.mrb[74].mxu1 }
 0x3e8   :  { %v1734_v30 = vadd.f32 %v2756_v29, %v2344_v6  ;;  %v1725_v31 = vpop.f32.mrb[75].mxu1  ;;  %2774 = vmatmul.mubr.msk.bf16.gmra.mrb[84].mxu0 %vm271_vm1, %v1756_v24 }
 0x3e9   :  { %v1726_v16 = vadd.f32 %v2344_v6, %v1725_v31 }
 0x3ea   :  { %v1758_v63 = vpack.c.bf16 %v1734_v30, %v1731_v8 }
 0x3eb   :  { %v1757_v32 = vpack.c.bf16 %v1726_v16, %v1723_v15  ;;  %v2338_v16 = vld [vmem:[%s3555_s0 + $0x5] ss:$0 sm:$0xff] }
 0x3ed   :  { %v2759_v33 = vpop.f32.mrb[76].mxu1  ;;  %2777 = vmatprep.mubr.msk.bf16.mxu0 %vm271_vm1, %v1757_v32 }
 0x3ee   :  { %v1747_v21 = vadd.f32 %v2759_v33, %v2344_v6  ;;  %v1738_v0 = vpop.f32.mrb[77].mxu1 }
 0x3ef   :  { %v1739_v34 = vadd.f32 %v2344_v6, %v1738_v0  ;;  %v2760_v18 = vpop.f32.mrb[78].mxu1 }
 0x3f0   :  { %v1750_v39 = vadd.f32 %v2760_v18, %v2344_v6  ;;  %v1741_v10 = vpop.f32.mrb[79].mxu1  ;;  %2778 = vmatmul.mubr.msk.bf16.gmra.mrb[88].mxu0 %vm271_vm1, %v1758_v63 }
 0x3f1   :  { %v1742_v40 = vadd.f32 %v2344_v6, %v1741_v10 }
 0x3f2   :  { %v1760_v5 = vpack.c.bf16 %v1750_v39, %v1747_v21 }
 0x3f3   :  { %v1759_v42 = vpack.c.bf16 %v1742_v40, %v1739_v34 }
 0x3f5   :  { %2781 = vmatprep.mubr.msk.bf16.mxu0 %vm271_vm1, %v1759_v42 }
 0x3f8   :  { %2782 = vmatmul.mubr.msk.bf16.gmra.mrb[92].mxu0 %vm271_vm1, %v1760_v5 }
 0x493   :  { %v2727_v6 = vpop.f32.mrb[64].mxu0 }
 0x494   :  { %v1537_v45 = vadd.f32 %v2727_v6, %v2324_v43  ;;  %v1528_v46 = vpop.f32.mrb[65].mxu0 }
 0x495   :  { %v1529_v62 = vadd.f32 %v2324_v43, %v1528_v46  ;;  %v2728_v12 = vpop.f32.mrb[66].mxu0 }
 0x496   :  { %v1598_v47 = vmul.f32 %v2337_v44, %v1537_v45  ;;  %v1540_v58 = vadd.f32 %v2728_v12, %v2324_v43  ;;  %v1531_v48 = vpop.f32.mrb[67].mxu0 }
 0x497   :  { %v1596_v9 = vmul.f32 %v2337_v44, %v1529_v62  ;;  %v1532_v49 = vadd.f32 %v2324_v43, %v1531_v48 }
 0x498   :  { %v3397_v50 = vadd.f32 %v1598_v47, %v3254_v60  ;;  %v1599_v51 = vmul.f32 %v2337_v44, %v1540_v58 }
 0x499   :  { %v3400_v59 = vadd.f32 %v1596_v9, %v3256_v20  ;;  %v1597_v52 = vmul.f32 %v2337_v44, %v1532_v49 }
 0x49a   :  { %v3403_v53 = vadd.f32 %v1599_v51, %v3260_v23 }
 0x49b   :  { %v3406_v14 = vadd.f32 %v1597_v52, %v3264_v25  ;;  %v2731_v55 = vpop.f32.mrb[68].mxu0 }
 0x49c   :  { %v1553_v57 = vadd.f32 %v2731_v55, %v2324_v43  ;;  %v1544_v61 = vpop.f32.mrb[69].mxu0 }
 0x49d   :  { %v1545_v22 = vadd.f32 %v2324_v43, %v1544_v61  ;;  %v2732_v24 = vpop.f32.mrb[70].mxu0 }
 0x49e   :  { %v1602_v26 = vmul.f32 %v2337_v44, %v1553_v57  ;;  %v1556_v27 = vadd.f32 %v2732_v24, %v2324_v43  ;;  %v1547_v60 = vpop.f32.mrb[71].mxu0 }
 0x49f   :  { %v1600_v8 = vmul.f32 %v2337_v44, %v1545_v22  ;;  %v1548_v28 = vadd.f32 %v2324_v43, %v1547_v60 }
 0x4a0   :  { %v3409_v20 = vadd.f32 %v1602_v26, %v3274_v1  ;;  %v1603_v15 = vmul.f32 %v2337_v44, %v1556_v27 }
 0x4a1   :  { %v3412_v23 = vadd.f32 %v1600_v8, %v3276_v41  ;;  %v1601_v29 = vmul.f32 %v2337_v44, %v1548_v28 }
 0x4a2   :  { %v3415_v25 = vadd.f32 %v1603_v15, %v3280_v2 }
 0x4a3   :  { %v3418_v30 = vadd.f32 %v1601_v29, %v3287_v7  ;;  %v2735_v31 = vpop.f32.mrb[72].mxu0 }
 0x4a4   :  { %v1569_v63 = vadd.f32 %v2735_v31, %v2324_v43  ;;  %v1560_v32 = vpop.f32.mrb[73].mxu0 }
 0x4a5   :  { %v1561_v1 = vadd.f32 %v2324_v43, %v1560_v32  ;;  %v2736_v33 = vpop.f32.mrb[74].mxu0 }
 0x4a6   :  { %v1619_v21 = vmul.f32 %v2338_v16, %v1569_v63  ;;  %v1572_v0 = vadd.f32 %v2736_v33, %v2324_v43  ;;  %v1563_v41 = vpop.f32.mrb[75].mxu0 }
 0x4a7   :  { %v1617_v34 = vmul.f32 %v2338_v16, %v1561_v1  ;;  %v1564_v18 = vadd.f32 %v2324_v43, %v1563_v41 }
 0x4a8   :  { %v3424_v2 = vadd.f32 %v1619_v21, %v3300_v13  ;;  %v1620_v39 = vmul.f32 %v2338_v16, %v1572_v0 }
 0x4a9   :  { %v3427_v7 = vadd.f32 %v1617_v34, %v3302_v54  ;;  %v1618_v10 = vmul.f32 %v2338_v16, %v1564_v18 }
 0x4aa   :  { %v3430_v40 = vadd.f32 %v1620_v39, %v3306_v56 }
 0x4ab   :  { %v3433_v5 = vadd.f32 %v1618_v10, %v3310_v19  ;;  %v2739_v42 = vpop.f32.mrb[76].mxu0  ;;  %v2364_v19 = vld [vmem:[%s3553_s5 + $0x7] ss:$0 sm:$0xff] }
 0x4ac   :  { %v1585_v3 = vadd.f32 %v2739_v42, %v2324_v43  ;;  %v1576_v4 = vpop.f32.mrb[77].mxu0 }
 0x4ad   :  { %v1577_v11 = vadd.f32 %v2324_v43, %v1576_v4  ;;  %v2740_v38 = vpop.f32.mrb[78].mxu0 }
 0x4ae   :  { %v1623_v6 = vmul.f32 %v2338_v16, %v1585_v3  ;;  %v1588_v44 = vadd.f32 %v2740_v38, %v2324_v43  ;;  %v1579_v13 = vpop.f32.mrb[79].mxu0 }
 0x4af   :  { %v1621_v45 = vmul.f32 %v2338_v16, %v1577_v11  ;;  %v1580_v46 = vadd.f32 %v2324_v43, %v1579_v13 }
 0x4b0   :  { %v3436_v54 = vadd.f32 %v1623_v6, %v3320_v17  ;;  %v1624_v62 = vmul.f32 %v2338_v16, %v1588_v44 }
 0x4b1   :  { %v3439_v56 = vadd.f32 %v1621_v45, %v3322_v35  ;;  %v1622_v12 = vmul.f32 %v2338_v16, %v1580_v46 }
 0x4b2   :  { %v3445_v47 = vadd.f32 %v1624_v62, %v3329_v36 }
 0x4b3   :  { %v3448_v58 = vadd.f32 %v1622_v12, %v3331_v37  ;;  %v2771_v48 = vpop.f32.mrb[80].mxu0 }
 0x4b4   :  { %v1866_v43 = vadd.f32 %v2771_v48, %v2364_v19  ;;  %v1857_v9 = vpop.f32.mrb[81].mxu0 }
 0x4b5   :  { %v1858_v17 = vadd.f32 %v2364_v19, %v1857_v9  ;;  %v2772_v49 = vpop.f32.mrb[82].mxu0 }
 0x4b6   :  { %v1869_v51 = vadd.f32 %v2772_v49, %v2364_v19  ;;  %v1860_v52 = vpop.f32.mrb[83].mxu0  ;;  %v1922_v55 = vmax.f32 %v1866_v43, 0.0 }
 0x4b7   :  { %v1861_v35 = vadd.f32 %v2364_v19, %v1860_v52  ;;  %v1920_v61 = vmax.f32 %v1858_v17, 0.0 }
 0x4b8   :  { %v1923_v57 = vmax.f32 %v1869_v51, 0.0 }
 0x4b9   :  { %v1921_v22 = vmax.f32 %v1861_v35, 0.0 }
 0x4ba   :  { %v1937_v24 = vpack.c.bf16 %v1923_v57, %v1922_v55  ;;  %v3461_v57 = vld [vmem:[%s3554_s6 + $0x3] ss:$0 sm:$0xff] }
 0x4bb   :  { %v1936_v26 = vpack.c.bf16 %v1921_v22, %v1920_v61  ;;  %v2775_v27 = vpop.f32.mrb[84].mxu0 }
 0x4bc   :  { %v1882_v36 = vadd.f32 %v2775_v27, %v2364_v19  ;;  %v1873_v60 = vpop.f32.mrb[85].mxu0 }
 0x4bd   :  { %v1874_v8 = vadd.f32 %v2364_v19, %v1873_v60  ;;  %v2776_v37 = vpop.f32.mrb[86].mxu0  ;;  %2793 = vmatprep.mubr.msk.bf16.mxu1 %vm271_vm1, %v1936_v26 }
 0x4be   :  { %v1885_v28 = vadd.f32 %v2776_v37, %v2364_v19  ;;  %v1876_v15 = vpop.f32.mrb[87].mxu0  ;;  %2794 = vmatmul.mubr.msk.bf16.vlgmr.msra.gmra.mrb[80].mxu1 %vm271_vm1, %v1937_v24  ;;  %v1926_v31 = vmax.f32 %v1882_v36, 0.0 }
 0x4bf   :  { %v1877_v29 = vadd.f32 %v2364_v19, %v1876_v15  ;;  %v1924_v63 = vmax.f32 %v1874_v8, 0.0 }
 0x4c0   :  { %v1927_v16 = vmax.f32 %v1885_v28, 0.0 }
 0x4c1   :  { %v1925_v32 = vmax.f32 %v1877_v29, 0.0 }
 0x4c2   :  { %v1939_v1 = vpack.c.bf16 %v1927_v16, %v1926_v31 }
 0x4c3   :  { %v1938_v33 = vpack.c.bf16 %v1925_v32, %v1924_v63  ;;  %v2779_v21 = vpop.f32.mrb[88].mxu0 }
 0x4c4   :  { %v1898_v0 = vadd.f32 %v2779_v21, %v2364_v19  ;;  %v1889_v41 = vpop.f32.mrb[89].mxu0 }
 0x4c5   :  { %v1890_v34 = vadd.f32 %v2364_v19, %v1889_v41  ;;  %v2780_v18 = vpop.f32.mrb[90].mxu0  ;;  %2797 = vmatprep.mubr.msk.bf16.mxu1 %vm271_vm1, %v1938_v33 }
 0x4c6   :  { %v1901_v39 = vadd.f32 %v2780_v18, %v2364_v19  ;;  %v1892_v10 = vpop.f32.mrb[91].mxu0  ;;  %2798 = vmatmul.mubr.msk.bf16.gmra.mrb[84].mxu1 %vm271_vm1, %v1939_v1  ;;  %v1930_v3 = vmax.f32 %v1898_v0, 0.0 }
 0x4c7   :  { %v1893_v42 = vadd.f32 %v2364_v19, %v1892_v10  ;;  %v1928_v11 = vmax.f32 %v1890_v34, 0.0 }
 0x4c8   :  { %v1931_v4 = vmax.f32 %v1901_v39, 0.0 }
 0x4c9   :  { %v1929_v38 = vmax.f32 %v1893_v42, 0.0 }
 0x4ca   :  { %v1941_v6 = vpack.c.bf16 %v1931_v4, %v1930_v3 }
 0x4cb   :  { %v1940_v44 = vpack.c.bf16 %v1929_v38, %v1928_v11  ;;  %v2783_v13 = vpop.f32.mrb[92].mxu0 }
 0x4cc   :  { %v1914_v45 = vadd.f32 %v2783_v13, %v2364_v19  ;;  %v1905_v46 = vpop.f32.mrb[93].mxu0 }
 0x4cd   :  { %v1906_v62 = vadd.f32 %v2364_v19, %v1905_v46  ;;  %v2784_v12 = vpop.f32.mrb[94].mxu0  ;;  %2801 = vmatprep.mubr.msk.bf16.mxu1 %vm271_vm1, %v1940_v44 }
 0x4ce   :  { %v1917_v48 = vadd.f32 %v2784_v12, %v2364_v19  ;;  %v1908_v43 = vpop.f32.mrb[95].mxu0  ;;  %2802 = vmatmul.mubr.msk.bf16.gmra.mrb[88].mxu1 %vm271_vm1, %v1941_v6  ;;  %v1934_v17 = vmax.f32 %v1914_v45, 0.0 }
 0x4cf   :  { %v1909_v9 = vadd.f32 %v2364_v19, %v1908_v43  ;;  %v1932_v51 = vmax.f32 %v1906_v62, 0.0  ;;  %v2399_v19 = vld [vmem:[%s3555_s0 + $0x6] ss:$0 sm:$0xff] }
 0x4d0   :  { %v1935_v49 = vmax.f32 %v1917_v48, 0.0 }
 0x4d1   :  { %v1933_v52 = vmax.f32 %v1909_v9, 0.0 }
 0x4d2   :  { %v1943_v35 = vpack.c.bf16 %v1935_v49, %v1934_v17 }
 0x4d3   :  { %v1942_v55 = vpack.c.bf16 %v1933_v52, %v1932_v51 }
 0x4d5   :  { %2805 = vmatprep.mubr.msk.bf16.mxu1 %vm271_vm1, %v1942_v55 }
 0x4d6   :  { %2806 = vmatmul.mubr.msk.bf16.gmra.mrb[92].mxu1 %vm271_vm1, %v1943_v35 }
 0x591   :  { %v2795_v61 = vpop.f32.mrb[80].mxu1 }
 0x592   :  { %v2052_v22 = vadd.f32 %v2795_v61, %v3461_v57  ;;  %v2043_v24 = vpop.f32.mrb[81].mxu1 }
 0x593   :  { %v2044_v26 = vadd.f32 %v3461_v57, %v2043_v24  ;;  %v2796_v27 = vpop.f32.mrb[82].mxu1 }
 0x594   :  { %v2113_v36 = vmul.f32 %v2399_v19, %v2052_v22  ;;  %v2055_v60 = vadd.f32 %v2796_v27, %v3461_v57  ;;  %v2046_v8 = vpop.f32.mrb[83].mxu1 }
 0x595   :  { %v2111_v37 = vmul.f32 %v2399_v19, %v2044_v26  ;;  %v2047_v28 = vadd.f32 %v3461_v57, %v2046_v8 }
 0x596   :  { %v2121_v15 = vadd.f32 %v2113_v36, %v3397_v50  ;;  %v2114_v29 = vmul.f32 %v2399_v19, %v2055_v60 }
 0x597   :  { %v2119_v31 = vadd.f32 %v2111_v37, %v3400_v59  ;;  %v2112_v16 = vmul.f32 %v2399_v19, %v2047_v28 }
 0x598   :  { %2150 = vst [vmem:[%s3556_s7 + $0x10] sm:$0xff] %v2121_v15  ;;  %v2122_v63 = vadd.f32 %v2114_v29, %v3403_v53 }
 0x599   :  { %2148 = vst [vmem:[%s3556_s7] sm:$0xff] %v2119_v31  ;;  %v2120_v32 = vadd.f32 %v2112_v16, %v3406_v14  ;;  %v2799_v1 = vpop.f32.mrb[84].mxu1 }
 0x59a   :  { %2151 = vst [vmem:[%s3556_s7 + $0x18] sm:$0xff] %v2122_v63  ;;  %v2068_v50 = vadd.f32 %v2799_v1, %v3461_v57  ;;  %v2059_v59 = vpop.f32.mrb[85].mxu1 }
 0x59b   :  { %2149 = vst [vmem:[%s3556_s7 + $0x8] sm:$0xff] %v2120_v32  ;;  %v2060_v53 = vadd.f32 %v3461_v57, %v2059_v59  ;;  %v2800_v33 = vpop.f32.mrb[86].mxu1 }
 0x59c   :  { %v2117_v21 = vmul.f32 %v2399_v19, %v2068_v50  ;;  %v2071_v0 = vadd.f32 %v2800_v33, %v3461_v57  ;;  %v2062_v41 = vpop.f32.mrb[87].mxu1 }
 0x59d   :  { %v2115_v14 = vmul.f32 %v2399_v19, %v2060_v53  ;;  %v2063_v34 = vadd.f32 %v3461_v57, %v2062_v41 }
 0x59e   :  { %v2125_v18 = vadd.f32 %v2117_v21, %v3409_v20  ;;  %v2118_v39 = vmul.f32 %v2399_v19, %v2071_v0  ;;  %v2400_v20 = vld [vmem:[%s3555_s0 + $0x7] ss:$0 sm:$0xff] }
 0x59f   :  { %v2123_v10 = vadd.f32 %v2115_v14, %v3412_v23  ;;  %v2116_v42 = vmul.f32 %v2399_v19, %v2063_v34 }
 0x5a0   :  { %2154 = vst [vmem:[%s3556_s7 + $0x30] sm:$0xff] %v2125_v18  ;;  %v2126_v3 = vadd.f32 %v2118_v39, %v3415_v25 }
 0x5a1   :  { %2152 = vst [vmem:[%s3556_s7 + $0x20] sm:$0xff] %v2123_v10  ;;  %v2124_v4 = vadd.f32 %v2116_v42, %v3418_v30  ;;  %v2803_v11 = vpop.f32.mrb[88].mxu1 }
 0x5a2   :  { %2155 = vst [vmem:[%s3556_s7 + $0x38] sm:$0xff] %v2126_v3  ;;  %v2084_v23 = vadd.f32 %v2803_v11, %v3461_v57  ;;  %v2075_v38 = vpop.f32.mrb[89].mxu1 }
 0x5a3   :  { %2153 = vst [vmem:[%s3556_s7 + $0x28] sm:$0xff] %v2124_v4  ;;  %v2076_v25 = vadd.f32 %v3461_v57, %v2075_v38  ;;  %v2804_v6 = vpop.f32.mrb[90].mxu1 }
 0x5a4   :  { %v2134_v30 = vmul.f32 %v2400_v20, %v2084_v23  ;;  %v2087_v44 = vadd.f32 %v2804_v6, %v3461_v57  ;;  %v2078_v13 = vpop.f32.mrb[91].mxu1 }
 0x5a5   :  { %v2132_v45 = vmul.f32 %v2400_v20, %v2076_v25  ;;  %v2079_v46 = vadd.f32 %v3461_v57, %v2078_v13 }
 0x5a6   :  { %v2142_v62 = vadd.f32 %v2134_v30, %v3424_v2  ;;  %v2135_v12 = vmul.f32 %v2400_v20, %v2087_v44 }
 0x5a7   :  { %v2140_v48 = vadd.f32 %v2132_v45, %v3427_v7  ;;  %v2133_v43 = vmul.f32 %v2400_v20, %v2079_v46 }
 0x5a8   :  { %2158 = vst [vmem:[%s3556_s7 + $0x50] sm:$0xff] %v2142_v62  ;;  %v2143_v9 = vadd.f32 %v2135_v12, %v3430_v40 }
 0x5a9   :  { %2156 = vst [vmem:[%s3556_s7 + $0x40] sm:$0xff] %v2140_v48  ;;  %v2141_v17 = vadd.f32 %v2133_v43, %v3433_v5  ;;  %v2807_v49 = vpop.f32.mrb[92].mxu1 }
 0x5aa   :  { %2159 = vst [vmem:[%s3556_s7 + $0x58] sm:$0xff] %v2143_v9  ;;  %v2100_v2 = vadd.f32 %v2807_v49, %v3461_v57  ;;  %v2091_v7 = vpop.f32.mrb[93].mxu1 }
 0x5ab   :  { %2157 = vst [vmem:[%s3556_s7 + $0x48] sm:$0xff] %v2141_v17  ;;  %v2092_v40 = vadd.f32 %v3461_v57, %v2091_v7  ;;  %v2808_v51 = vpop.f32.mrb[94].mxu1 }
 0x5ac   :  { %v2138_v52 = vmul.f32 %v2400_v20, %v2100_v2  ;;  %v2103_v35 = vadd.f32 %v2808_v51, %v3461_v57  ;;  %v2094_v55 = vpop.f32.mrb[95].mxu1 }
 0x5ad   :  { %v2136_v5 = vmul.f32 %v2400_v20, %v2092_v40  ;;  %v2095_v61 = vadd.f32 %v3461_v57, %v2094_v55 }
 0x5ae   :  { %v2146_v19 = vadd.f32 %v2138_v52, %v3436_v54  ;;  %v2139_v22 = vmul.f32 %v2400_v20, %v2103_v35 }
 0x5af   :  { %v2144_v24 = vadd.f32 %v2136_v5, %v3439_v56  ;;  %v2137_v26 = vmul.f32 %v2400_v20, %v2095_v61 }
 0x5b0   :  { %2162 = vst [vmem:[%s3556_s7 + $0x70] sm:$0xff] %v2146_v19  ;;  %v2147_v27 = vadd.f32 %v2139_v22, %v3445_v47 }
 0x5b1   :  { %2160 = vst [vmem:[%s3556_s7 + $0x60] sm:$0xff] %v2144_v24  ;;  %v2145_v36 = vadd.f32 %v2137_v26, %v3448_v58 }
 0x5b2   :  { %2163 = vst [vmem:[%s3556_s7 + $0x78] sm:$0xff] %v2147_v27 }
 0x5b3   :  { %2161 = vst [vmem:[%s3556_s7 + $0x68] sm:$0xff] %v2145_v36 }

</bundles_post_ra>
